<compile_context>
chip_gen: v5e
topology: v5e:2x2
jax: 0.10.0
libtpu: 0.0.40
codegen_flags: <defaults>
</compile_context>

<pallas_src>
import functools

import jax
import jax.numpy as jnp
from jax.experimental import pallas as pl
from jax.experimental.pallas import tpu as pltpu


# Convention probe for XLA's narrowing bitcast (uint32 -> 2 x 16-bit): does minor index 0
# hold the LOW 16 bits?  Used to place the even-position (tap 0) value correctly.
_EVEN_IN_LOW = bool(
    jax.lax.bitcast_convert_type(jnp.asarray(0x00020001, dtype=jnp.uint32), jnp.uint16)[0] == 1
)


def _convt_kernel(x_ref, wt_ref, b_ref, o_ref, *, c, pack, even_in_low):
    # x_ref:  (1, C, tl)   activation tile in native NCL layout (L on lanes)
    # wt_ref: (2C, C)      fused, pre-transposed weight: row k*C+co holds W[:, co, k]
    # b_ref:  (2C, 1)      fused bias (f32), broadcast over lanes
    # o_ref:  pack=True : (1, C, tl) uint32, each lane holds the bf16 pair (even, odd)
    #         pack=False: (2, 1, C, tl), o_ref[k] is the tap-k result for this tile
    x = x_ref[0]                                                      # (C, tl)
    y = jnp.dot(wt_ref[...], x, preferred_element_type=jnp.float32)  # (2C, tl) on MXU
    y = y + b_ref[...]                                                # (2C, 1) broadcast
    y0 = y[:c, :]    # tap k=0 -> even output positions 2l
    y1 = y[c:, :]    # tap k=1 -> odd  output positions 2l+1

    if pack:
        # Round each tap to bf16, then pack the pair into one 32-bit lane.  bf16 -> f32
        # is exact, so bitcasting the widened value gives the bf16 bits in the HIGH 16
        # bits and zeros in the LOW 16 bits; a shift + or assembles the pair.  Pure
        # VPU bit ops - no cross-lane relayout, fully lane-dense 32-bit stores.
        h0 = pltpu.bitcast(y0.astype(jnp.bfloat16).astype(jnp.float32), jnp.uint32)
        h1 = pltpu.bitcast(y1.astype(jnp.bfloat16).astype(jnp.float32), jnp.uint32)
        if even_in_low:
            packed = (h0 >> 16) | h1
        else:
            packed = (h1 >> 16) | h0
        o_ref[0] = packed
    else:
        o_ref[0, 0] = y0.astype(o_ref.dtype)
        o_ref[1, 0] = y1.astype(o_ref.dtype)


def upsample1d_convtranspose(x, weight, bias, *, tl=2048):
    """ConvTranspose1d(C, C, kernel_size=2, stride=2, padding=0).

    x:      (N, C, L)        PyTorch NCL layout (f32 or bf16; bf16 is the fast path)
    weight: (C_in, C_out, 2) PyTorch ConvTranspose1d weight layout
    bias:   (C_out,)
    returns (N, C, 2*L) in x.dtype
    """
    N, C, L = x.shape
    assert weight.shape == (C, C, 2) and bias.shape == (C,)

    # Small-L path: fold the batch into the length axis so the lane width (and the MXU
    # N-dimension) becomes N*L instead of L.  Exact: k=2/s=2 transposed conv is
    # pointwise in l (no cross-position mixing), so sample boundaries are never crossed.
    if L < 128 and N > 1:
        xf = jnp.transpose(x, (1, 0, 2)).reshape(1, C, N * L)
        of = upsample1d_convtranspose(xf, weight, bias, tl=tl)        # (1, C, 2*N*L)
        return jnp.transpose(of.reshape(C, N, 2 * L), (1, 0, 2))       # (N, C, 2*L)

    pack = x.dtype == jnp.bfloat16   # bf16 path: in-kernel interleave via u32 packing

    # Flipped contraction (W^T @ X): y[k*C + co, l] = sum_ci W[ci, co, k] * x[ci, l].
    # Weight/bias prep is a tiny one-time op; both stay VMEM-resident across the grid.
    # NOTE: weight is cast to x.dtype (bf16 callers get bf16-rounded weights).
    wt = jnp.transpose(weight, (2, 1, 0)).reshape(2 * C, C).astype(x.dtype)
    b2 = jnp.concatenate([bias, bias]).reshape(2 * C, 1).astype(jnp.float32)

    # Lane tile along L: large (multiple of 128) tiles; a partial last tile is handled
    # by Pallas boundary masking.  When a single tile would cover everything and N == 1,
    # split into ~2 tiles so v7x's two TensorCores both get work.
    if L <= tl:
        if N == 1 and L >= 256:
            tl_eff = 128 * pl.cdiv(L, 2 * 128)      # aim for 2 parallel grid steps
        else:
            tl_eff = L                              # full-extent block (legal for any L)
    else:
        tl_eff = max(128, (tl // 128) * 128)
    n_lt = pl.cdiv(L, tl_eff)

    in_item = jnp.dtype(x.dtype).itemsize
    kernel = functools.partial(_convt_kernel, c=C, pack=pack, even_in_low=_EVEN_IN_LOW)

    if pack:
        out_shape = jax.ShapeDtypeStruct((N, C, L), jnp.uint32)
        out_specs = pl.BlockSpec((1, C, tl_eff), lambda n, j: (n, 0, j))
        out_bytes = N * C * L * 4
    else:
        out_shape = jax.ShapeDtypeStruct((2, N, C, L), x.dtype)
        out_specs = pl.BlockSpec((2, 1, C, tl_eff), lambda n, j: (0, n, 0, j))
        out_bytes = 2 * N * C * L * in_item

    cost = pl.CostEstimate(
        flops=4 * N * L * C * C,                     # 2*C MACs per output element
        transcendentals=0,
        bytes_accessed=N * C * L * in_item + 2 * C * C * in_item + 2 * C * 4 + out_bytes,
    )

    out = pl.pallas_call(
        kernel,
        out_shape=out_shape,
        grid_spec=pltpu.PrefetchScalarGridSpec(
            num_scalar_prefetch=0,
            grid=(N, n_lt),
            in_specs=[
                pl.BlockSpec((1, C, tl_eff), lambda n, j: (n, 0, j)),   # x tile (NCL native)
                pl.BlockSpec((2 * C, C), lambda n, j: (0, 0)),          # fused W^T (resident)
                pl.BlockSpec((2 * C, 1), lambda n, j: (0, 0)),          # fused bias (resident)
            ],
            out_specs=out_specs,
        ),
        compiler_params=pltpu.CompilerParams(
            dimension_semantics=("parallel", "parallel"),
            vmem_limit_bytes=48 * 1024 * 1024,       # > v5e's 16 MiB default, < v7x's 64 MiB
        ),
        cost_estimate=cost,
    )(x, wt, b2)

    if pack:
        # Free unpack: bitcast u32 -> (.., L, 2) bf16 pairs, then merge the minor dims.
        pairs = jax.lax.bitcast_convert_type(out, jnp.bfloat16)        # (N, C, L, 2)
        return pairs.reshape(N, C, 2 * L)

    # f32 fallback: single interleave transpose (one extra HBM round trip of the output).
    # TODO(synk): replace with an in-kernel XLU interleave once reliably lowerable.
    return jnp.transpose(out, (1, 2, 3, 0)).reshape(N, C, 2 * L)


def _reference(x, weight, bias):
    N, C, L = x.shape
    ref = jnp.einsum("ncl,cok->nolk", x, weight).reshape(N, C, 2 * L)
    return ref + bias[None, :, None]


if __name__ == "__main__":
    key = jax.random.PRNGKey(0)
    k_x, k_w, k_b, k_x2, k_x3 = jax.random.split(key, 5)

    # Module-default channel count (num_channels=256); small batch / length for the demo.
    C = 256
    bound = (1.0 / (C * 2)) ** 0.5
    weight_f32 = jax.random.uniform(k_w, (C, C, 2), jnp.float32, -bound, bound)
    bias_f32 = jax.random.uniform(k_b, (C,), jnp.float32, -bound, bound)
    weight_bf16 = weight_f32.astype(jnp.bfloat16)

    # --- Test A: bf16 fast path (packed output, no wrapper transpose) + small-L fold ---
    N, L = 2, 8
    x = jax.random.normal(k_x, (N, C, L), jnp.float32).astype(jnp.bfloat16)
    out = jax.block_until_ready(upsample1d_convtranspose(x, weight_bf16, bias_f32))
    assert out.shape == (N, C, 2 * L) and out.dtype == jnp.bfloat16, (out.shape, out.dtype)
    ref = _reference(x.astype(jnp.float32), weight_bf16.astype(jnp.float32), bias_f32)
    err = float(jnp.max(jnp.abs(out.astype(jnp.float32) - ref)))
    assert err < 3e-2, err

    # --- Test B: bf16 path, tiled with a partial (masked) last lane tile ---
    N2, L2 = 1, 640
    x2 = jax.random.normal(k_x2, (N2, C, L2), jnp.float32).astype(jnp.bfloat16)
    out2 = jax.block_until_ready(upsample1d_convtranspose(x2, weight_bf16, bias_f32, tl=512))
    assert out2.shape == (N2, C, 2 * L2), out2.shape
    ref2 = _reference(x2.astype(jnp.float32), weight_bf16.astype(jnp.float32), bias_f32)
    err2 = float(jnp.max(jnp.abs(out2.astype(jnp.float32) - ref2)))
    assert err2 < 3e-2, err2

    # --- Test C: f32 fallback path, default tile (exercises the 2-way megacore split) ---
    N3, L3 = 1, 640
    x3 = jax.random.normal(k_x3, (N3, C, L3), jnp.float32)
    out3 = jax.block_until_ready(upsample1d_convtranspose(x3, weight_f32, bias_f32))
    assert out3.shape == (N3, C, 2 * L3), out3.shape
    ref3 = _reference(x3, weight_f32, bias_f32)
    assert jnp.allclose(out3, ref3, atol=1e-4, rtol=1e-4), float(jnp.max(jnp.abs(out3 - ref3)))

    print("KERNEL_OK")
</pallas_src>

<mosaic_0001>
module attributes {stable_mosaic.version = 11 : i64} {
  func.func @_convt_kernel(%arg0: i32, %arg1: i32, %arg2: memref<1x256x16xbf16, #tpu.memory_space<vmem>>, %arg3: memref<512x256xbf16, #tpu.memory_space<vmem>>, %arg4: memref<512x1xf32, #tpu.memory_space<vmem>>, %arg5: memref<1x256x16xi32, #tpu.memory_space<vmem>>) attributes {dimension_semantics = [#tpu.dimension_semantics<parallel>, #tpu.dimension_semantics<parallel>], iteration_bounds = array<i64: 1, 1>, scalar_prefetch = 0 : i64, scratch_operands = 0 : i64, tpu.core_type = #tpu.core_type<tc>, window_params = [{transform_indices = @transform_0, window_bounds = array<i64: 1, 256, 16>}, {pipeline_mode = #tpu.pipeline_mode<synchronous>, transform_indices = @transform_1, window_bounds = array<i64: 512, 256>}, {pipeline_mode = #tpu.pipeline_mode<synchronous>, transform_indices = @transform_2, window_bounds = array<i64: 512, 1>}, {transform_indices = @transform_3, window_bounds = array<i64: 1, 256, 16>}]} {
    %c0 = arith.constant 0 : index
    %c0_0 = arith.constant 0 : index
    %c0_1 = arith.constant 0 : index
    %0 = vector.load %arg2[%c0, %c0_0, %c0_1] : memref<1x256x16xbf16, #tpu.memory_space<vmem>>, vector<1x256x16xbf16>
    %1 = vector.shape_cast %0 : vector<1x256x16xbf16> to vector<256x16xbf16>
    %c0_2 = arith.constant 0 : index
    %c0_3 = arith.constant 0 : index
    %2 = vector.load %arg3[%c0_2, %c0_3] : memref<512x256xbf16, #tpu.memory_space<vmem>>, vector<512x256xbf16>
    %cst = arith.constant dense<0.000000e+00> : vector<512x16xf32>
    %3 = tpu.matmul %2, %1, %cst {dimension_numbers = #tpu.dot_dimension_numbers<[1], [0], [0], [1], [0, 0, 1, 1], [], []>} : vector<512x256xbf16>, vector<256x16xbf16>, vector<512x16xf32> -> vector<512x16xf32>
    %c0_4 = arith.constant 0 : index
    %c0_5 = arith.constant 0 : index
    %4 = vector.load %arg4[%c0_4, %c0_5] : memref<512x1xf32, #tpu.memory_space<vmem>>, vector<512x1xf32>
    %5 = vector.broadcast %4 : vector<512x1xf32> to vector<512x16xf32>
    %6 = arith.addf %3, %5 : vector<512x16xf32>
    %7 = vector.extract_strided_slice %6 {offsets = [0, 0], sizes = [256, 16], strides = [1, 1]} : vector<512x16xf32> to vector<256x16xf32>
    %8 = vector.extract_strided_slice %6 {offsets = [256, 0], sizes = [256, 16], strides = [1, 1]} : vector<512x16xf32> to vector<256x16xf32>
    %9 = arith.truncf %7 : vector<256x16xf32> to vector<256x16xbf16>
    %10 = arith.extf %9 : vector<256x16xbf16> to vector<256x16xf32>
    %11 = tpu.bitcast %10 : vector<256x16xf32> -> vector<256x16xi32>
    %12 = arith.truncf %8 : vector<256x16xf32> to vector<256x16xbf16>
    %13 = arith.extf %12 : vector<256x16xbf16> to vector<256x16xf32>
    %14 = tpu.bitcast %13 : vector<256x16xf32> -> vector<256x16xi32>
    %c16_i32 = arith.constant 16 : i32
    %15 = vector.broadcast %c16_i32 : i32 to vector<256x16xi32>
    %16 = arith.shrui %11, %15 : vector<256x16xi32>
    %17 = arith.ori %16, %14 : vector<256x16xi32>
    %c0_6 = arith.constant 0 : index
    %c0_7 = arith.constant 0 : index
    %c0_8 = arith.constant 0 : index
    %18 = vector.load %arg5[%c0_6, %c0_7, %c0_8] : memref<1x256x16xi32, #tpu.memory_space<vmem>>, vector<1x256x16xi32>
    %19 = vector.shape_cast %18 : vector<1x256x16xi32> to vector<256x16xi32>
    %20 = vector.shape_cast %17 : vector<256x16xi32> to vector<1x256x16xi32>
    tpu.vector_store %arg5[%c0_6, %c0_7, %c0_8], %20 {strides = array<i32>} : memref<1x256x16xi32, #tpu.memory_space<vmem>>, vector<1x256x16xi32>,
    return
  }
  func.func @transform_0(%arg0: i32, %arg1: i32) -> (i32, i32, i32) {
    %c0_i32 = arith.constant 0 : i32
    %c0_i32_0 = arith.constant 0 : i32
    return %arg0, %c0_i32, %arg1 : i32, i32, i32
  }
  func.func @transform_1(%arg0: i32, %arg1: i32) -> (i32, i32) {
    %c0_i32 = arith.constant 0 : i32
    %c0_i32_0 = arith.constant 0 : i32
    %c0_i32_1 = arith.constant 0 : i32
    return %c0_i32, %c0_i32_0 : i32, i32
  }
  func.func @transform_2(%arg0: i32, %arg1: i32) -> (i32, i32) {
    %c0_i32 = arith.constant 0 : i32
    %c0_i32_0 = arith.constant 0 : i32
    %c0_i32_1 = arith.constant 0 : i32
    return %c0_i32, %c0_i32_0 : i32, i32
  }
  func.func @transform_3(%arg0: i32, %arg1: i32) -> (i32, i32, i32) {
    %c0_i32 = arith.constant 0 : i32
    %c0_i32_0 = arith.constant 0 : i32
    return %arg0, %c0_i32, %arg1 : i32, i32, i32
  }
}

</mosaic_0001>

<bundles_post_ra>
// kernel: tpu_custom_call.1
= control target key start
LH: loop header
LB: loop body
LE: loop exit
PB: predicated region body
PF: predicated region fallthrough
CT: control target
= control target key end

     0   :  { %v1961_v0 = vmov 0   ;;  %vm1504_vm0 = vcmask 130048   ;;  %s2848_s2 = inlined_call_operand.vmem [shape: f32[512,1], index: 2, kind: input, shape index: {}]   ;;  %s2849_s0 = inlined_call_operand.vmem [shape: bf16[1,256,16], index: 0, kind: input, shape index: {}]   ;;  %s2850_s1 = inlined_call_operand.vmem [shape: bf16[512,256], index: 1, kind: input, shape index: {}]   ;;  %s2851_s3 = inlined_call_operand.vmem [shape: u32[1,256,16], index: 3, kind: output, shape index: {}]  }
   0x1   :  { %1960 = vset.pattern.permute.xlu2 %v1961_v0  ;;  %1959 = vset.pattern.permute.xlu1 %v1961_v0  ;;  %v114_v1 = vld [vmem:[%s2848_s2 + $0x20] sm:$0xff]  ;;  %v112_v2 = vld [vmem:[%s2848_s2 + $0x10] sm:$0xff]  ;;  %v1868_v4 = vld [vmem:[%s2849_s0 + $0x38] sm:$0xff] }
   0x2   :  { %v110_v3 = vld [vmem:[%s2848_s2] sm:$0xff]  ;;  %1958 = vset.pattern.permute.xlu0 %v1961_v0  ;;  %196 = vperm.xlu2 %1960, %v114_v1   ;;  %v1876_v5 = vld [vmem:[%s2849_s0 + $0x78] sm:$0xff]  ;;  %v1867_v6 = vld [vmem:[%s2849_s0 + $0x30] sm:$0xff] }
   0x3   :  { %186 = vperm.xlu1 %1959, %v112_v2   ;;  %176 = vperm.xlu0 %1958, %v110_v3   ;;  %v1875_v7 = vld [vmem:[%s2849_s0 + $0x70] sm:$0xff]  ;;  %v115_v8 = vld [vmem:[%s2848_s2 + $0x28] sm:$0xff]  ;;  %v113_v9 = vld [vmem:[%s2848_s2 + $0x18] sm:$0xff] }
   0x4   :  { %910 = vmatpush.bf16.msra.mxu0 %v1868_v4  ;;  %1941 = vmatpush.bf16.msra.mxu2 %v1868_v4  ;;  %v111_v10 = vld [vmem:[%s2848_s2 + $0x8] sm:$0xff]  ;;  %v1865_v13 = vld [vmem:[%s2849_s0 + $0x20] sm:$0xff]  ;;  %v117_v16 = vld [vmem:[%s2848_s2 + $0x38] sm:$0xff] }
   0x5   :  { %1079 = vmatpush.bf16.msra.mxu1 %v1876_v5  ;;  %1949 = vmatpush.bf16.msra.mxu3 %v1876_v5  ;;  %v1866_v11 = vld [vmem:[%s2849_s0 + $0x28] sm:$0xff]  ;;  %v1873_v14 = vld [vmem:[%s2849_s0 + $0x60] sm:$0xff]  ;;  %v116_v17 = vld [vmem:[%s2848_s2 + $0x30] sm:$0xff] }
   0x6   :  { %v1874_v12 = vld [vmem:[%s2849_s0 + $0x68] sm:$0xff]  ;;  %v118_v15 = vld [vmem:[%s2848_s2 + $0x40] sm:$0xff]  ;;  %v1864_v18 = vld [vmem:[%s2849_s0 + $0x18] sm:$0xff] }
   0x7   :  { %v1872_v19 = vld [vmem:[%s2849_s0 + $0x58] sm:$0xff]  ;;  %v1863_v20 = vld [vmem:[%s2849_s0 + $0x10] sm:$0xff]  ;;  %v119_v24 = vld [vmem:[%s2848_s2 + $0x48] sm:$0xff] }
   0x8   :  { %911 = vmatpush.bf16.msra.mxu0 %v1867_v6  ;;  %1942 = vmatpush.bf16.msra.mxu2 %v1867_v6  ;;  %v1871_v21 = vld [vmem:[%s2849_s0 + $0x50] sm:$0xff]  ;;  %v121_v22 = vld [vmem:[%s2848_s2 + $0x58] sm:$0xff]  ;;  %v1862_v25 = vld [vmem:[%s2849_s0 + $0x8] sm:$0xff] }
   0x9   :  { %1080 = vmatpush.bf16.msra.mxu1 %v1875_v7  ;;  %1950 = vmatpush.bf16.msra.mxu3 %v1875_v7  ;;  %v120_v23 = vld [vmem:[%s2848_s2 + $0x50] sm:$0xff]  ;;  %v1870_v26 = vld [vmem:[%s2849_s0 + $0x48] sm:$0xff]  ;;  %v1861_v27 = vld [vmem:[%s2849_s0] sm:$0xff] }
   0xa   :  { %201 = vperm.xlu2 %1960, %v115_v8   ;;  %v1869_v28 = vld [vmem:[%s2849_s0 + $0x40] sm:$0xff]  ;;  %v1878_v30 = vld [vmem:[%s2850_s1 + $0x4] sm:$0xf0]  ;;  %v1545_v34 = vld [vmem:[%s2850_s1 + $0x8] sm:$0xf0] }
   0xb   :  { %191 = vperm.xlu1 %1959, %v113_v9   ;;  %181 = vperm.xlu0 %1958, %v111_v10   ;;  %v1543_v29 = vld [vmem:[%s2850_s1] sm:$0xf]  ;;  %v1910_v32 = vld [vmem:[%s2850_s1 + $0x104] sm:$0xf0]  ;;  %v1877_v33 = vld [vmem:[%s2850_s1 + $0x4] sm:$0xf] }
   0xc   :  { %912 = vmatpush.bf16.msra.mxu0 %v1866_v11  ;;  %1943 = vmatpush.bf16.msra.mxu2 %v1866_v11  ;;  %v1671_v31 = vld [vmem:[%s2850_s1 + $0x100] sm:$0xf]  ;;  %v1909_v35 = vld [vmem:[%s2850_s1 + $0x104] sm:$0xf]  ;;  %v1673_v36 = vld [vmem:[%s2850_s1 + $0x108] sm:$0xf0]  ;;  %v1544_v40 = vor.u32 %v1878_v30, %v1543_v29  ;;  %v1548_v42 = vor.u32 %v1877_v33, %v1545_v34 }
   0xd   :  { %1081 = vmatpush.bf16.msra.mxu1 %v1874_v12  ;;  %1951 = vmatpush.bf16.msra.mxu3 %v1874_v12  ;;  %v124_v37 = vld [vmem:[%s2848_s2 + $0x70] sm:$0xff]  ;;  %v123_v38 = vld [vmem:[%s2848_s2 + $0x68] sm:$0xff]  ;;  %v122_v39 = vld [vmem:[%s2848_s2 + $0x60] sm:$0xff]  ;;  %v1672_v41 = vor.u32 %v1910_v32, %v1671_v31  ;;  %v1676_v43 = vor.u32 %v1909_v35, %v1673_v36 }
   0xe   :  { %v127_v44 = vld [vmem:[%s2848_s2 + $0x88] sm:$0xff]  ;;  %v126_v45 = vld [vmem:[%s2848_s2 + $0x80] sm:$0xff]  ;;  %v125_v46 = vld [vmem:[%s2848_s2 + $0x78] sm:$0xff] }
   0xf   :  { %v1551_v47 = vld [vmem:[%s2850_s1 + $0x10] sm:$0xf]  ;;  %v1880_v48 = vld [vmem:[%s2850_s1 + $0x14] sm:$0xf0]  ;;  %v1879_v51 = vld [vmem:[%s2850_s1 + $0x14] sm:$0xf] }
  0x10   :  { %913 = vmatpush.bf16.msra.mxu0 %v1865_v13  ;;  %1944 = vmatpush.bf16.msra.mxu2 %v1865_v13  ;;  %v1679_v49 = vld [vmem:[%s2850_s1 + $0x110] sm:$0xf]  ;;  %v1912_v50 = vld [vmem:[%s2850_s1 + $0x114] sm:$0xf0]  ;;  %v1553_v52 = vld [vmem:[%s2850_s1 + $0x18] sm:$0xf0]  ;;  %v1552_v58 = vor.u32 %v1880_v48, %v1551_v47 }
  0x11   :  { %1082 = vmatpush.bf16.msra.mxu1 %v1873_v14  ;;  %1952 = vmatpush.bf16.msra.mxu3 %v1873_v14  ;;  %v1911_v53 = vld [vmem:[%s2850_s1 + $0x114] sm:$0xf]  ;;  %v1681_v54 = vld [vmem:[%s2850_s1 + $0x118] sm:$0xf0]  ;;  %v130_v55 = vld [vmem:[%s2848_s2 + $0xa0] sm:$0xff]  ;;  %v1680_v59 = vor.u32 %v1912_v50, %v1679_v49  ;;  %v1556_v60 = vor.u32 %v1879_v51, %v1553_v52 }
  0x12   :  { %216 = vperm.xlu2 %1960, %v118_v15   ;;  %v129_v56 = vld [vmem:[%s2848_s2 + $0x98] sm:$0xff]  ;;  %v128_v57 = vld [vmem:[%s2848_s2 + $0x90] sm:$0xff]  ;;  %v1684_v61 = vor.u32 %v1911_v53, %v1681_v54  ;;  %v131_v0 = vld [vmem:[%s2848_s2 + $0xa8] sm:$0xff] }
  0x13   :  { %211 = vperm.xlu1 %1959, %v117_v16   ;;  %206 = vperm.xlu0 %1958, %v116_v17   ;;  %v133_v62 = vld [vmem:[%s2848_s2 + $0xb8] sm:$0xff]  ;;  %v132_v63 = vld [vmem:[%s2848_s2 + $0xb0] sm:$0xff]  ;;  %v1559_v1 = vld [vmem:[%s2850_s1 + $0x20] sm:$0xf] }
  0x14   :  { %914 = vmatpush.bf16.msra.mxu0 %v1864_v18  ;;  %1945 = vmatpush.bf16.msra.mxu2 %v1864_v18  ;;  %v1882_v2 = vld [vmem:[%s2850_s1 + $0x24] sm:$0xf0]  ;;  %v1687_v3 = vld [vmem:[%s2850_s1 + $0x120] sm:$0xf]  ;;  %v1881_v5 = vld [vmem:[%s2850_s1 + $0x24] sm:$0xf] }
  0x15   :  { %1083 = vmatpush.bf16.msra.mxu1 %v1872_v19  ;;  %1953 = vmatpush.bf16.msra.mxu3 %v1872_v19  ;;  %v1914_v4 = vld [vmem:[%s2850_s1 + $0x124] sm:$0xf0]  ;;  %v1561_v6 = vld [vmem:[%s2850_s1 + $0x28] sm:$0xf0]  ;;  %v1913_v7 = vld [vmem:[%s2850_s1 + $0x124] sm:$0xf]  ;;  %v1560_v12 = vor.u32 %v1882_v2, %v1559_v1 }
  0x16   :  { %v1689_v8 = vld [vmem:[%s2850_s1 + $0x128] sm:$0xf0]  ;;  %v136_v9 = vld [vmem:[%s2848_s2 + $0xd0] sm:$0xff]  ;;  %v134_v11 = vld [vmem:[%s2848_s2 + $0xc0] sm:$0xff]  ;;  %v1688_v13 = vor.u32 %v1914_v4, %v1687_v3  ;;  %v1564_v14 = vor.u32 %v1881_v5, %v1561_v6 }
  0x17   :  { %v135_v10 = vld [vmem:[%s2848_s2 + $0xc8] sm:$0xff]  ;;  %v1692_v15 = vor.u32 %v1913_v7, %v1689_v8  ;;  %v138_v17 = vld [vmem:[%s2848_s2 + $0xe0] sm:$0xff]  ;;  %v137_v18 = vld [vmem:[%s2848_s2 + $0xd8] sm:$0xff] }
  0x18   :  { %915 = vmatpush.bf16.msra.mxu0 %v1863_v20  ;;  %1946 = vmatpush.bf16.msra.mxu2 %v1863_v20  ;;  %v139_v16 = vld [vmem:[%s2848_s2 + $0xe8] sm:$0xff]  ;;  %v1567_v19 = vld [vmem:[%s2850_s1 + $0x30] sm:$0xf]  ;;  %v1884_v20 = vld [vmem:[%s2850_s1 + $0x34] sm:$0xf0] }
  0x19   :  { %1084 = vmatpush.bf16.msra.mxu1 %v1871_v21  ;;  %1954 = vmatpush.bf16.msra.mxu3 %v1871_v21  ;;  %v1695_v21 = vld [vmem:[%s2850_s1 + $0x130] sm:$0xf]  ;;  %v1568_v30 = vor.u32 %v1884_v20, %v1567_v19  ;;  %v145_v34 = vld [vmem:[%s2848_s2 + $0x118] sm:$0xff]  ;;  %v143_v36 = vld [vmem:[%s2848_s2 + $0x108] sm:$0xff] }
  0x1a   :  { %231 = vperm.xlu2 %1960, %v121_v22   ;;  %v1916_v22 = vld [vmem:[%s2850_s1 + $0x134] sm:$0xf0]  ;;  %v140_v29 = vld [vmem:[%s2848_s2 + $0xf0] sm:$0xff]  ;;  %v147_v47 = vld [vmem:[%s2848_s2 + $0x128] sm:$0xff] }
  0x1b   :  { %226 = vperm.xlu1 %1959, %v120_v23   ;;  %221 = vperm.xlu0 %1958, %v119_v24   ;;  %v1883_v23 = vld [vmem:[%s2850_s1 + $0x34] sm:$0xf]  ;;  %v1569_v24 = vld [vmem:[%s2850_s1 + $0x38] sm:$0xf0]  ;;  %v1696_v31 = vor.u32 %v1916_v22, %v1695_v21  ;;  %v146_v48 = vld [vmem:[%s2848_s2 + $0x120] sm:$0xff] }
  0x1c   :  { %916 = vmatpush.bf16.msra.mxu0 %v1862_v25  ;;  %1947 = vmatpush.bf16.msra.mxu2 %v1862_v25  ;;  %v1915_v25 = vld [vmem:[%s2850_s1 + $0x134] sm:$0xf]  ;;  %v1572_v32 = vor.u32 %v1883_v23, %v1569_v24  ;;  %v151_v54 = vld [vmem:[%s2848_s2 + $0x148] sm:$0xff]  ;;  %v1713_v1 = vld [vmem:[%s2850_s1 + $0x158] sm:$0xf0] }
  0x1d   :  { %1085 = vmatpush.bf16.msra.mxu1 %v1870_v26  ;;  %1955 = vmatpush.bf16.msra.mxu3 %v1870_v26  ;;  %v1697_v26 = vld [vmem:[%s2850_s1 + $0x138] sm:$0xf0]  ;;  %v144_v35 = vld [vmem:[%s2848_s2 + $0x110] sm:$0xff]  ;;  %v154_v2 = vld [vmem:[%s2848_s2 + $0x160] sm:$0xff] }
  0x1e   :  { %v1700_v33 = vor.u32 %v1915_v25, %v1697_v26  ;;  %v153_v3 = vld [vmem:[%s2848_s2 + $0x158] sm:$0xff]  ;;  %v152_v4 = vld [vmem:[%s2848_s2 + $0x150] sm:$0xff]  ;;  %v1719_v20 = vld [vmem:[%s2850_s1 + $0x160] sm:$0xf] }
  0x1f   :  { %v1922_v21 = vld [vmem:[%s2850_s1 + $0x164] sm:$0xf0]  ;;  %v1889_v22 = vld [vmem:[%s2850_s1 + $0x64] sm:$0xf]  ;;  %v1593_v23 = vld [vmem:[%s2850_s1 + $0x68] sm:$0xf0] }
  0x20   :  { %917 = vmatpush.bf16.msra.mxu0 %v1861_v27  ;;  %1948 = vmatpush.bf16.msra.mxu2 %v1861_v27  ;;  %v142_v27 = vld [vmem:[%s2848_s2 + $0x100] sm:$0xff]  ;;  %v1721_v25 = vld [vmem:[%s2850_s1 + $0x168] sm:$0xf0]  ;;  %v160_v26 = vld [vmem:[%s2848_s2 + $0x190] sm:$0xff] }
  0x21   :  { %1086 = vmatpush.bf16.msra.mxu1 %v1869_v28  ;;  %1956 = vmatpush.bf16.msra.mxu3 %v1869_v28  ;;  %v141_v28 = vld [vmem:[%s2848_s2 + $0xf8] sm:$0xff]  ;;  %v1921_v24 = vld [vmem:[%s2850_s1 + $0x164] sm:$0xf] }
  0x22   :  { %246 = vperm.xlu2 %1960, %v124_v37  }
  0x23   :  { %241 = vperm.xlu1 %1959, %v123_v38   ;;  %236 = vperm.xlu0 %1958, %v122_v39   ;;  %v1575_v38 = vld [vmem:[%s2850_s1 + $0x40] sm:$0xf]  ;;  %v1886_v39 = vld [vmem:[%s2850_s1 + $0x44] sm:$0xf0] }
  0x24   :  { %918 = vmatmul.bf16.vlgmr.msra.gmra.mxu0 %v1544_v40  ;;  %998 = vmatmul.bf16.vlgmr.msra.gmra.mxu2 %v1672_v41  ;;  %v1703_v40 = vld [vmem:[%s2850_s1 + $0x140] sm:$0xf]  ;;  %v1918_v41 = vld [vmem:[%s2850_s1 + $0x144] sm:$0xf0]  ;;  %v1576_v49 = vor.u32 %v1886_v39, %v1575_v38  ;;  %v161_v39 = vld [vmem:[%s2848_s2 + $0x198] sm:$0xff] }
  0x25   :  { %1087 = vmatmul.bf16.vlgmr.msra.gmra.mxu1 %v1548_v42  ;;  %1167 = vmatmul.bf16.vlgmr.msra.gmra.mxu3 %v1676_v43  ;;  %v1885_v42 = vld [vmem:[%s2850_s1 + $0x44] sm:$0xf]  ;;  %v1577_v43 = vld [vmem:[%s2850_s1 + $0x48] sm:$0xf0]  ;;  %v1704_v50 = vor.u32 %v1918_v41, %v1703_v40  ;;  %v1599_v41 = vld [vmem:[%s2850_s1 + $0x70] sm:$0xf] }
  0x26   :  { %v1580_v51 = vor.u32 %v1885_v42, %v1577_v43  ;;  %v162_v38 = vld [vmem:[%s2848_s2 + $0x1a0] sm:$0xff]  ;;  %v1892_v42 = vld [vmem:[%s2850_s1 + $0x74] sm:$0xf0] }
  0x2a   :  { %261 = vperm.xlu2 %1960, %v127_v44   ;;  %v1917_v44 = vld [vmem:[%s2850_s1 + $0x144] sm:$0xf] }
  0x2b   :  { %256 = vperm.xlu1 %1959, %v126_v45   ;;  %251 = vperm.xlu0 %1958, %v125_v46   ;;  %v1705_v45 = vld [vmem:[%s2850_s1 + $0x148] sm:$0xf0]  ;;  %v148_v46 = vld [vmem:[%s2848_s2 + $0x130] sm:$0xff] }
  0x2c   :  { %v1708_v52 = vor.u32 %v1917_v44, %v1705_v45  ;;  %v1727_v45 = vld [vmem:[%s2850_s1 + $0x170] sm:$0xf] }
  0x32   :  { %276 = vperm.xlu2 %1960, %v130_v55   ;;  %v150_v55 = vld [vmem:[%s2848_s2 + $0x140] sm:$0xff] }
  0x33   :  { %271 = vperm.xlu1 %1959, %v129_v56   ;;  %266 = vperm.xlu0 %1958, %v128_v57   ;;  %v149_v56 = vld [vmem:[%s2848_s2 + $0x138] sm:$0xff] }
  0x34   :  { %923 = vmatmul.bf16.gmra.mxu0 %v1552_v58  ;;  %1003 = vmatmul.bf16.gmra.mxu2 %v1680_v59  ;;  %v1583_v58 = vld [vmem:[%s2850_s1 + $0x50] sm:$0xf]  ;;  %v1888_v59 = vld [vmem:[%s2850_s1 + $0x54] sm:$0xf0] }
  0x35   :  { %1092 = vmatmul.bf16.gmra.mxu1 %v1556_v60  ;;  %1172 = vmatmul.bf16.gmra.mxu3 %v1684_v61  ;;  %v1711_v60 = vld [vmem:[%s2850_s1 + $0x150] sm:$0xf]  ;;  %v1920_v61 = vld [vmem:[%s2850_s1 + $0x154] sm:$0xf0]  ;;  %v1584_v5 = vor.u32 %v1888_v59, %v1583_v58 }
  0x36   :  { %v1712_v6 = vor.u32 %v1920_v61, %v1711_v60 }
  0x3a   :  { %291 = vperm.xlu2 %1960, %v133_v62   ;;  %v1887_v62 = vld [vmem:[%s2850_s1 + $0x54] sm:$0xf] }
  0x3b   :  { %286 = vperm.xlu1 %1959, %v132_v63   ;;  %281 = vperm.xlu0 %1958, %v131_v0   ;;  %v1585_v63 = vld [vmem:[%s2850_s1 + $0x58] sm:$0xf0]  ;;  %v1919_v0 = vld [vmem:[%s2850_s1 + $0x154] sm:$0xf] }
  0x3c   :  { %v1588_v7 = vor.u32 %v1887_v62, %v1585_v63  ;;  %v1716_v8 = vor.u32 %v1919_v0, %v1713_v1  ;;  %v169_v63 = vld [vmem:[%s2848_s2 + $0x1d8] sm:$0xff]  ;;  %v168_v0 = vld [vmem:[%s2848_s2 + $0x1d0] sm:$0xff]  ;;  %v167_v1 = vld [vmem:[%s2848_s2 + $0x1c8] sm:$0xff] }
  0x42   :  { %306 = vperm.xlu2 %1960, %v136_v9  }
  0x43   :  { %301 = vperm.xlu1 %1959, %v135_v10   ;;  %296 = vperm.xlu0 %1958, %v134_v11  }
  0x44   :  { %928 = vmatmul.bf16.gmra.mxu0 %v1560_v12  ;;  %1008 = vmatmul.bf16.gmra.mxu2 %v1688_v13  ;;  %v157_v12 = vld [vmem:[%s2848_s2 + $0x178] sm:$0xff]  ;;  %v156_v13 = vld [vmem:[%s2848_s2 + $0x170] sm:$0xff] }
  0x45   :  { %1097 = vmatmul.bf16.gmra.mxu1 %v1564_v14  ;;  %1177 = vmatmul.bf16.gmra.mxu3 %v1692_v15  ;;  %v155_v14 = vld [vmem:[%s2848_s2 + $0x168] sm:$0xff] }
  0x4a   :  { %321 = vperm.xlu2 %1960, %v139_v16   ;;  %v1591_v16 = vld [vmem:[%s2850_s1 + $0x60] sm:$0xf] }
  0x4b   :  { %316 = vperm.xlu1 %1959, %v138_v17   ;;  %311 = vperm.xlu0 %1958, %v137_v18   ;;  %v1890_v17 = vld [vmem:[%s2850_s1 + $0x64] sm:$0xf0] }
  0x52   :  { %336 = vperm.xlu2 %1960, %v142_v27   ;;  %v159_v27 = vld [vmem:[%s2848_s2 + $0x188] sm:$0xff] }
  0x53   :  { %331 = vperm.xlu1 %1959, %v141_v28   ;;  %326 = vperm.xlu0 %1958, %v140_v29   ;;  %v158_v28 = vld [vmem:[%s2848_s2 + $0x180] sm:$0xff]  ;;  %v1592_v29 = vor.u32 %v1890_v17, %v1591_v16  ;;  %v1737_v16 = vld [vmem:[%s2850_s1 + $0x188] sm:$0xf0]  ;;  %v172_v17 = vld [vmem:[%s2848_s2 + $0x1f0] sm:$0xff] }
  0x54   :  { %933 = vmatmul.bf16.gmra.mxu0 %v1568_v30  ;;  %1013 = vmatmul.bf16.gmra.mxu2 %v1696_v31  ;;  %v1720_v30 = vor.u32 %v1922_v21, %v1719_v20  ;;  %v1596_v31 = vor.u32 %v1889_v22, %v1593_v23  ;;  %v171_v20 = vld [vmem:[%s2848_s2 + $0x1e8] sm:$0xff]  ;;  %v170_v21 = vld [vmem:[%s2848_s2 + $0x1e0] sm:$0xff] }
  0x55   :  { %1102 = vmatmul.bf16.gmra.mxu1 %v1572_v32  ;;  %1182 = vmatmul.bf16.gmra.mxu3 %v1700_v33  ;;  %v1724_v32 = vor.u32 %v1921_v24, %v1721_v25 }
  0x5a   :  { %351 = vperm.xlu2 %1960, %v145_v34  }
  0x5b   :  { %346 = vperm.xlu1 %1959, %v144_v35   ;;  %341 = vperm.xlu0 %1958, %v143_v36   ;;  %v163_v36 = vld [vmem:[%s2848_s2 + $0x1a8] sm:$0xff] }
  0x5c   :  { %v2234_v37 = vpop.permute.xlu2 %196 }
  0x62   :  { %366 = vperm.xlu2 %1960, %v148_v46   ;;  %v1924_v46 = vld [vmem:[%s2850_s1 + $0x174] sm:$0xf0] }
  0x63   :  { %361 = vperm.xlu1 %1959, %v147_v47   ;;  %356 = vperm.xlu0 %1958, %v146_v48   ;;  %v1891_v47 = vld [vmem:[%s2850_s1 + $0x74] sm:$0xf]  ;;  %v1601_v48 = vld [vmem:[%s2850_s1 + $0x78] sm:$0xf0] }
  0x64   :  { %938 = vmatmul.bf16.gmra.mxu0 %v1576_v49  ;;  %1018 = vmatmul.bf16.gmra.mxu2 %v1704_v50  ;;  %v2269_v53 = vpop.permute.xlu2 %201  ;;  %v1923_v49 = vld [vmem:[%s2850_s1 + $0x174] sm:$0xf]  ;;  %v1729_v50 = vld [vmem:[%s2850_s1 + $0x178] sm:$0xf0]  ;;  %v1604_v58 = vor.u32 %v1891_v47, %v1601_v48  ;;  %v1896_v47 = vld [vmem:[%s2850_s1 + $0x94] sm:$0xf0] }
  0x65   :  { %1107 = vmatmul.bf16.gmra.mxu1 %v1580_v51  ;;  %1187 = vmatmul.bf16.gmra.mxu3 %v1708_v52  ;;  %v166_v51 = vld [vmem:[%s2848_s2 + $0x1c0] sm:$0xff]  ;;  %v165_v52 = vld [vmem:[%s2848_s2 + $0x1b8] sm:$0xff]  ;;  %v1732_v59 = vor.u32 %v1923_v49, %v1729_v50 }
  0x6a   :  { %381 = vperm.xlu2 %1960, %v151_v54   ;;  %v164_v54 = vld [vmem:[%s2848_s2 + $0x1b0] sm:$0xff] }
  0x6b   :  { %376 = vperm.xlu1 %1959, %v150_v55   ;;  %371 = vperm.xlu0 %1958, %v149_v56   ;;  %v1600_v55 = vor.u32 %v1892_v42, %v1599_v41  ;;  %v1728_v56 = vor.u32 %v1924_v46, %v1727_v45  ;;  %v1615_v46 = vld [vmem:[%s2850_s1 + $0x90] sm:$0xf] }
  0x6c   :  { %v2280_v57 = vpop.permute.xlu2 %216 }
  0x72   :  { %396 = vperm.xlu2 %1960, %v154_v2  }
  0x73   :  { %391 = vperm.xlu1 %1959, %v153_v3   ;;  %386 = vperm.xlu0 %1958, %v152_v4   ;;  %v1607_v3 = vld [vmem:[%s2850_s1 + $0x80] sm:$0xf]  ;;  %v1894_v4 = vld [vmem:[%s2850_s1 + $0x84] sm:$0xf0] }
  0x74   :  { %943 = vmatmul.bf16.gmra.mxu0 %v1584_v5  ;;  %1023 = vmatmul.bf16.gmra.mxu2 %v1712_v6  ;;  %v2315_v9 = vpop.permute.xlu2 %231  ;;  %v1608_v22 = vor.u32 %v1894_v4, %v1607_v3  ;;  %v1616_v3 = vor.u32 %v1896_v47, %v1615_v46  ;;  %v1625_v47 = vld [vmem:[%s2850_s1 + $0xa8] sm:$0xf0] }
  0x75   :  { %1112 = vmatmul.bf16.gmra.mxu1 %v1588_v7  ;;  %1192 = vmatmul.bf16.gmra.mxu3 %v1716_v8  ;;  %v2317_v10 = vpop.permute.xlu1 %186  ;;  %v2319_v11 = vpop.permute.xlu0 %176  ;;  %v1735_v7 = vld [vmem:[%s2850_s1 + $0x180] sm:$0xf]  ;;  %v1926_v8 = vld [vmem:[%s2850_s1 + $0x184] sm:$0xf0] }
  0x76   :  { %v1736_v23 = vor.u32 %v1926_v8, %v1735_v7 }
  0x7a   :  { %411 = vperm.xlu2 %1960, %v157_v12   ;;  %v1893_v12 = vld [vmem:[%s2850_s1 + $0x84] sm:$0xf] }
  0x7b   :  { %406 = vperm.xlu1 %1959, %v156_v13   ;;  %401 = vperm.xlu0 %1958, %v155_v14   ;;  %v1609_v13 = vld [vmem:[%s2850_s1 + $0x88] sm:$0xf0]  ;;  %v1925_v14 = vld [vmem:[%s2850_s1 + $0x184] sm:$0xf] }
  0x7c   :  { %v2330_v15 = vpop.permute.xlu2 %246  ;;  %v1612_v25 = vor.u32 %v1893_v12, %v1609_v13 }
  0x7d   :  { %v2338_v18 = vpop.permute.xlu1 %191  ;;  %v2340_v19 = vpop.permute.xlu0 %181 }
  0x82   :  { %426 = vperm.xlu2 %1960, %v160_v26   ;;  %v1740_v26 = vor.u32 %v1925_v14, %v1737_v16 }
  0x83   :  { %421 = vperm.xlu1 %1959, %v159_v27   ;;  %416 = vperm.xlu0 %1958, %v158_v28  }
  0x84   :  { %948 = vmatmul.bf16.gmra.mxu0 %v1592_v29  ;;  %1028 = vmatmul.bf16.gmra.mxu2 %v1720_v30  ;;  %v2369_v33 = vpop.permute.xlu2 %261 }
  0x85   :  { %1117 = vmatmul.bf16.gmra.mxu1 %v1596_v31  ;;  %1197 = vmatmul.bf16.gmra.mxu3 %v1724_v32  ;;  %v2371_v34 = vpop.permute.xlu1 %211  ;;  %v2373_v35 = vpop.permute.xlu0 %206 }
  0x8a   :  { %441 = vperm.xlu2 %1960, %v163_v36  }
  0x8b   :  { %436 = vperm.xlu1 %1959, %v162_v38   ;;  %431 = vperm.xlu0 %1958, %v161_v39   ;;  %v173_v39 = vld [vmem:[%s2848_s2 + $0x1f8] sm:$0xff] }
  0x8c   :  { %v2384_v40 = vpop.permute.xlu2 %276 }
  0x8d   :  { %v2392_v43 = vpop.permute.xlu1 %226  ;;  %v2394_v44 = vpop.permute.xlu0 %221 }
  0x92   :  { %456 = vperm.xlu2 %1960, %v166_v51   ;;  %v1743_v51 = vld [vmem:[%s2850_s1 + $0x190] sm:$0xf] }
  0x93   :  { %451 = vperm.xlu1 %1959, %v165_v52   ;;  %446 = vperm.xlu0 %1958, %v164_v54   ;;  %v1928_v52 = vld [vmem:[%s2850_s1 + $0x194] sm:$0xf0]  ;;  %v1895_v54 = vld [vmem:[%s2850_s1 + $0x94] sm:$0xf] }
  0x94   :  { %953 = vmatmul.bf16.gmra.mxu0 %v1600_v55  ;;  %1033 = vmatmul.bf16.gmra.mxu2 %v1728_v56  ;;  %v2423_v60 = vpop.permute.xlu2 %291  ;;  %v1617_v55 = vld [vmem:[%s2850_s1 + $0x98] sm:$0xf0]  ;;  %v1927_v56 = vld [vmem:[%s2850_s1 + $0x194] sm:$0xf]  ;;  %v1744_v4 = vor.u32 %v1928_v52, %v1743_v51  ;;  %v1753_v51 = vld [vmem:[%s2850_s1 + $0x1a8] sm:$0xf0] }
  0x95   :  { %1122 = vmatmul.bf16.gmra.mxu1 %v1604_v58  ;;  %1202 = vmatmul.bf16.gmra.mxu3 %v1732_v59  ;;  %v2425_v61 = vpop.permute.xlu1 %241  ;;  %v2427_v62 = vpop.permute.xlu0 %236  ;;  %v1745_v58 = vld [vmem:[%s2850_s1 + $0x198] sm:$0xf0]  ;;  %v1620_v12 = vor.u32 %v1895_v54, %v1617_v55 }
  0x96   :  { %v1748_v13 = vor.u32 %v1927_v56, %v1745_v58 }
  0x9a   :  { %471 = vperm.xlu2 %1960, %v169_v63  }
  0x9b   :  { %466 = vperm.xlu1 %1959, %v168_v0   ;;  %461 = vperm.xlu0 %1958, %v167_v1  }
  0x9c   :  { %v2438_v2 = vpop.permute.xlu2 %306 }
  0x9d   :  { %v2446_v5 = vpop.permute.xlu1 %256  ;;  %v2448_v6 = vpop.permute.xlu0 %251 }
  0xa1   :  { %v919_v24 = vpop.f32.mrf.mxu0 }
  0xa2   :  { %v1088_v27 = vpop.f32.mrf.mxu1  ;;  %486 = vperm.xlu2 %1960, %v172_v17   ;;  %v920_v28 = vadd.f32 %v919_v24, %v2319_v11 }
  0xa3   :  { %481 = vperm.xlu1 %1959, %v171_v20   ;;  %476 = vperm.xlu0 %1958, %v170_v21  }
  0xa4   :  { %958 = vmatmul.bf16.gmra.mxu0 %v1608_v22  ;;  %1038 = vmatmul.bf16.gmra.mxu2 %v1736_v23  ;;  %v2478_v29 = vpop.permute.xlu2 %321  ;;  %v1089_v32 = vadd.f32 %v1088_v27, %v920_v28 }
  0xa5   :  { %1127 = vmatmul.bf16.gmra.mxu1 %v1612_v25  ;;  %1207 = vmatmul.bf16.gmra.mxu3 %v1740_v26  ;;  %v2480_v30 = vpop.permute.xlu1 %271  ;;  %v2482_v31 = vpop.permute.xlu0 %266 }
  0xa6   :  { %v1248_v42 = vpack.c.bf16 %v1089_v32, %v1089_v32  ;;  %v1623_v32 = vld [vmem:[%s2850_s1 + $0xa0] sm:$0xf] }
  0xa7   :  { %v999_v36 = vpop.f32.mrf.mxu2 }
  0xa8   :  { %v1168_v38 = vpop.f32.mrf.mxu3  ;;  %v1280_v59 = vunpack.c.l.bf16 %v1248_v42  ;;  %v1751_v42 = vld [vmem:[%s2850_s1 + $0x1a0] sm:$0xf] }
  0xa9   :  { %v2487_v11 = vpop.f32.mrf.mxu0 }
  0xaa   :  { %v2489_v41 = vpop.f32.mrf.mxu1  ;;  %v1440_v16 = vshrl.u32 %v1280_v59, 16 }
  0xab   :  { %491 = vperm.xlu0 %1958, %v173_v39  }
  0xac   :  { %v337_v45 = vpop.permute.xlu2 %336 }
  0xad   :  { %v1000_v48 = vadd.f32 %v999_v36, %v337_v45  ;;  %v2497_v49 = vpop.permute.xlu1 %286  ;;  %v2499_v50 = vpop.permute.xlu0 %281  ;;  %v1898_v36 = vld [vmem:[%s2850_s1 + $0xa4] sm:$0xf0]  ;;  %v1897_v45 = vld [vmem:[%s2850_s1 + $0xa4] sm:$0xf] }
  0xae   :  { %v1624_v58 = vor.u32 %v1898_v36, %v1623_v32 }
  0xaf   :  { %v1169_v63 = vadd.f32 %v1168_v38, %v1000_v48  ;;  %v2519_v0 = vpop.f32.mrf.mxu2  ;;  %v1929_v48 = vld [vmem:[%s2850_s1 + $0x1a4] sm:$0xf] }
  0xb0   :  { %v2521_v1 = vpop.f32.mrf.mxu3 }
  0xb1   :  { %v1344_v7 = vpack.c.bf16 %v1169_v63, %v1169_v63  ;;  %v924_v8 = vpop.f32.mrf.mxu0 }
  0xb2   :  { %v1093_v14 = vpop.f32.mrf.mxu1 }
  0xb3   :  { %v1376_v17 = vunpack.c.l.bf16 %v1344_v7 }
  0xb4   :  { %963 = vmatmul.bf16.gmra.mxu0 %v1616_v3  ;;  %1043 = vmatmul.bf16.gmra.mxu2 %v1744_v4  ;;  %v352_v52 = vpop.permute.xlu2 %351  ;;  %v1628_v3 = vor.u32 %v1897_v45, %v1625_v47  ;;  %v1756_v4 = vor.u32 %v1929_v48, %v1753_v51 }
  0xb5   :  { %v1472_v20 = vor.u32 %v1440_v16, %v1376_v17  ;;  %1132 = vmatmul.bf16.gmra.mxu1 %v1620_v12  ;;  %1212 = vmatmul.bf16.gmra.mxu3 %v1748_v13  ;;  %v2523_v21 = vpop.permute.xlu1 %301  ;;  %v2525_v22 = vpop.permute.xlu0 %296  ;;  %v922_v16 = vadd.f32 %v2487_v11, %v2340_v19  ;;  %v925_v17 = vadd.f32 %v924_v8, %v2317_v10 }
  0xb7   :  { %1505 = vst.msk [vmem:[%s2851_s3] sm:$0xff] %vm1504_vm0, %v1472_v20  ;;  %v1004_v23 = vpop.f32.mrf.mxu2  ;;  %v1091_v32 = vadd.f32 %v2489_v41, %v922_v16  ;;  %v1631_v41 = vld [vmem:[%s2850_s1 + $0xb0] sm:$0xf] }
  0xb8   :  { %v2531_v24 = vpop.f32.mrf.mxu3 }
  0xb9   :  { %v926_v25 = vpop.f32.mrf.mxu0  ;;  %v1249_v11 = vpack.c.bf16 %v1091_v32, %v1091_v32 }
  0xba   :  { %v927_v26 = vadd.f32 %v926_v25, %v2338_v18  ;;  %v1095_v27 = vpop.f32.mrf.mxu1  ;;  %v1930_v18 = vld [vmem:[%s2850_s1 + $0x1a4] sm:$0xf0] }
  0xbb   :  { %v1752_v59 = vor.u32 %v1930_v18, %v1751_v42  ;;  %v1094_v42 = vadd.f32 %v1093_v14, %v925_v17  ;;  %v1900_v14 = vld [vmem:[%s2850_s1 + $0xb4] sm:$0xf0] }
  0xbc   :  { %v1096_v28 = vadd.f32 %v1095_v27, %v927_v26 }
  0xbd   :  { %v2540_v38 = vpop.permute.xlu1 %316  ;;  %v2542_v39 = vpop.permute.xlu0 %311 }
  0xbe   :  { %v1251_v46 = vpack.c.bf16 %v1096_v28, %v1096_v28 }
  0xbf   :  { %v1006_v54 = vpop.f32.mrf.mxu2 }
  0xc0   :  { %v1007_v55 = vadd.f32 %v1006_v54, %v352_v52  ;;  %v1175_v56 = vpop.f32.mrf.mxu3  ;;  %v1283_v7 = vunpack.c.l.bf16 %v1251_v46  ;;  %v1250_v46 = vpack.c.bf16 %v1094_v42, %v1094_v42  ;;  %v1759_v52 = vld [vmem:[%s2850_s1 + $0x1b0] sm:$0xf]  ;;  %v1899_v54 = vld [vmem:[%s2850_s1 + $0xb4] sm:$0xf] }
  0xc1   :  { %v929_v63 = vpop.f32.mrf.mxu0 }
  0xc2   :  { %v1176_v12 = vadd.f32 %v1175_v56, %v1007_v55  ;;  %v1098_v13 = vpop.f32.mrf.mxu1  ;;  %v1443_v27 = vshrl.u32 %v1283_v7, 16  ;;  %v930_v47 = vadd.f32 %v929_v63, %v2234_v37  ;;  %v1633_v37 = vld [vmem:[%s2850_s1 + $0xb8] sm:$0xf0]  ;;  %v1281_v63 = vunpack.c.l.bf16 %v1249_v11 }
  0xc3   :  { %v1632_v7 = vor.u32 %v1900_v14, %v1631_v41 }
  0xc4   :  { %v1347_v20 = vpack.c.bf16 %v1176_v12, %v1176_v12  ;;  %968 = vmatmul.bf16.gmra.mxu0 %v1624_v58  ;;  %1048 = vmatmul.bf16.gmra.mxu2 %v1752_v59  ;;  %v1931_v58 = vld [vmem:[%s2850_s1 + $0x1b4] sm:$0xf]  ;;  %v1761_v59 = vld [vmem:[%s2850_s1 + $0x1b8] sm:$0xf0]  ;;  %v1282_v12 = vunpack.c.l.bf16 %v1250_v46  ;;  %v1441_v11 = vshrl.u32 %v1281_v63, 16 }
  0xc5   :  { %1137 = vmatmul.bf16.gmra.mxu1 %v1628_v3  ;;  %1217 = vmatmul.bf16.gmra.mxu3 %v1756_v4  ;;  %v2565_v25 = vpop.permute.xlu1 %331  ;;  %v2567_v26 = vpop.permute.xlu0 %326  ;;  %v1764_v32 = vor.u32 %v1931_v58, %v1761_v59 }
  0xc6   :  { %v1379_v28 = vunpack.c.l.bf16 %v1347_v20  ;;  %v1099_v20 = vadd.f32 %v1098_v13, %v930_v47 }
  0xc7   :  { %v1009_v36 = vpop.f32.mrf.mxu2 }
  0xc8   :  { %v1475_v18 = vor.u32 %v1443_v27, %v1379_v28  ;;  %v2570_v45 = vpop.f32.mrf.mxu3  ;;  %v1636_v28 = vor.u32 %v1899_v54, %v1633_v37  ;;  %v367_v54 = vpop.permute.xlu2 %366 }
  0xc9   :  { %v931_v19 = vpop.f32.mrf.mxu0 }
  0xca   :  { %1508 = vst.msk [vmem:[%s2851_s3 + $0x18] sm:$0xff] %vm1504_vm0, %v1475_v18  ;;  %v1100_v10 = vpop.f32.mrf.mxu1  ;;  %v932_v8 = vadd.f32 %v931_v19, %v2269_v53  ;;  %v1932_v53 = vld [vmem:[%s2850_s1 + $0x1b4] sm:$0xf0] }
  0xcb   :  { %v1760_v17 = vor.u32 %v1932_v53, %v1759_v52 }
  0xcc   :  { %v1101_v3 = vadd.f32 %v1100_v10, %v932_v8  ;;  %v1442_v8 = vshrl.u32 %v1282_v12, 16 }
  0xcd   :  { %v347_v48 = vpop.permute.xlu1 %346  ;;  %v342_v51 = vpop.permute.xlu0 %341 }
  0xce   :  { %v1005_v55 = vadd.f32 %v1004_v23, %v347_v48  ;;  %v1002_v56 = vadd.f32 %v2519_v0, %v342_v51  ;;  %v1253_v10 = vpack.c.bf16 %v1101_v3, %v1101_v3 }
  0xcf   :  { %v1011_v4 = vpop.f32.mrf.mxu2 }
  0xd0   :  { %v1174_v23 = vadd.f32 %v2531_v24, %v1005_v55  ;;  %v1171_v0 = vadd.f32 %v2521_v1, %v1002_v56  ;;  %v1180_v16 = vpop.f32.mrf.mxu3  ;;  %v1252_v1 = vpack.c.bf16 %v1099_v20, %v1099_v20 }
  0xd1   :  { %v934_v27 = vpop.f32.mrf.mxu0 }
  0xd2   :  { %v1346_v42 = vpack.c.bf16 %v1174_v23, %v1174_v23  ;;  %v1345_v18 = vpack.c.bf16 %v1171_v0, %v1171_v0  ;;  %v935_v19 = vadd.f32 %v934_v27, %v2373_v35  ;;  %v1103_v48 = vpop.f32.mrf.mxu1  ;;  %v1285_v35 = vunpack.c.l.bf16 %v1253_v10  ;;  %v1901_v10 = vld [vmem:[%s2850_s1 + $0xc4] sm:$0xf] }
  0xd3   :  { %v1284_v3 = vunpack.c.l.bf16 %v1252_v1  ;;  %v1933_v1 = vld [vmem:[%s2850_s1 + $0x1c4] sm:$0xf] }
  0xd4   :  { %v1378_v41 = vunpack.c.l.bf16 %v1346_v42  ;;  %v1377_v46 = vunpack.c.l.bf16 %v1345_v18  ;;  %v1104_v14 = vadd.f32 %v1103_v48, %v935_v19  ;;  %973 = vmatmul.bf16.gmra.mxu0 %v1632_v7  ;;  %1053 = vmatmul.bf16.gmra.mxu2 %v1760_v17  ;;  %v1445_v17 = vshrl.u32 %v1285_v35, 16  ;;  %v1767_v18 = vld [vmem:[%s2850_s1 + $0x1c0] sm:$0xf] }
  0xd5   :  { %1142 = vmatmul.bf16.gmra.mxu1 %v1636_v28  ;;  %1222 = vmatmul.bf16.gmra.mxu3 %v1764_v32  ;;  %v362_v24 = vpop.permute.xlu1 %361  ;;  %v357_v13 = vpop.permute.xlu0 %356 }
  0xd6   :  { %v1474_v47 = vor.u32 %v1442_v8, %v1378_v41  ;;  %v1473_v51 = vor.u32 %v1441_v11, %v1377_v46  ;;  %v1254_v52 = vpack.c.bf16 %v1104_v14, %v1104_v14  ;;  %v1012_v53 = vadd.f32 %v1011_v4, %v362_v24  ;;  %v1934_v11 = vld [vmem:[%s2850_s1 + $0x1c4] sm:$0xf0]  ;;  %v1641_v14 = vld [vmem:[%s2850_s1 + $0xc8] sm:$0xf0] }
  0xd7   :  { %v1010_v55 = vadd.f32 %v1009_v36, %v357_v13  ;;  %v1014_v56 = vpop.f32.mrf.mxu2  ;;  %v1769_v24 = vld [vmem:[%s2850_s1 + $0x1c8] sm:$0xf0]  ;;  %v1768_v35 = vor.u32 %v1934_v11, %v1767_v18  ;;  %v1904_v11 = vld [vmem:[%s2850_s1 + $0xd4] sm:$0xf0] }
  0xd8   :  { %1507 = vst.msk [vmem:[%s2851_s3 + $0x10] sm:$0xff] %vm1504_vm0, %v1474_v47  ;;  %v1286_v37 = vunpack.c.l.bf16 %v1254_v52  ;;  %v1181_v58 = vadd.f32 %v1180_v16, %v1012_v53  ;;  %v1015_v59 = vadd.f32 %v1014_v56, %v367_v54  ;;  %v1183_v63 = vpop.f32.mrf.mxu3  ;;  %v1639_v16 = vld [vmem:[%s2850_s1 + $0xc0] sm:$0xf]  ;;  %v1644_v56 = vor.u32 %v1901_v10, %v1641_v14  ;;  %v1775_v10 = vld [vmem:[%s2850_s1 + $0x1d0] sm:$0xf] }
  0xd9   :  { %1506 = vst.msk [vmem:[%s2851_s3 + $0x8] sm:$0xff] %vm1504_vm0, %v1473_v51  ;;  %v1179_v4 = vadd.f32 %v2570_v45, %v1010_v55  ;;  %v936_v7 = vpop.f32.mrf.mxu0  ;;  %v1902_v45 = vld [vmem:[%s2850_s1 + $0xc4] sm:$0xf0]  ;;  %v1649_v14 = vld [vmem:[%s2850_s1 + $0xd8] sm:$0xf0] }
  0xda   :  { %v1349_v36 = vpack.c.bf16 %v1181_v58, %v1181_v58  ;;  %v1184_v12 = vadd.f32 %v1183_v63, %v1015_v59  ;;  %v937_v23 = vadd.f32 %v936_v7, %v2371_v34  ;;  %v1105_v0 = vpop.f32.mrf.mxu1  ;;  %v1446_v27 = vshrl.u32 %v1286_v37, 16 }
  0xdb   :  { %v1348_v20 = vpack.c.bf16 %v1179_v4, %v1179_v4  ;;  %v1444_v34 = vshrl.u32 %v1284_v3, 16  ;;  %v1640_v54 = vor.u32 %v1902_v45, %v1639_v16  ;;  %v1772_v37 = vor.u32 %v1933_v1, %v1769_v24  ;;  %v1935_v1 = vld [vmem:[%s2850_s1 + $0x1d4] sm:$0xf]  ;;  %v1777_v24 = vld [vmem:[%s2850_s1 + $0x1d8] sm:$0xf0] }
  0xdc   :  { %v1381_v28 = vunpack.c.l.bf16 %v1349_v36  ;;  %v1350_v32 = vpack.c.bf16 %v1184_v12, %v1184_v12  ;;  %v1106_v42 = vadd.f32 %v1105_v0, %v937_v23 }
  0xdd   :  { %v1380_v19 = vunpack.c.l.bf16 %v1348_v20  ;;  %v372_v48 = vpop.permute.xlu0 %371  ;;  %v377_v0 = vpop.permute.xlu1 %376 }
  0xde   :  { %v1477_v8 = vor.u32 %v1445_v17, %v1381_v28  ;;  %v1382_v41 = vunpack.c.l.bf16 %v1350_v32  ;;  %v1255_v46 = vpack.c.bf16 %v1106_v42, %v1106_v42 }
  0xdf   :  { %v1476_v13 = vor.u32 %v1444_v34, %v1380_v19  ;;  %v1016_v47 = vpop.f32.mrf.mxu2 }
  0xe0   :  { %1510 = vst.msk [vmem:[%s2851_s3 + $0x28] sm:$0xff] %vm1504_vm0, %v1477_v8  ;;  %v1478_v51 = vor.u32 %v1446_v27, %v1382_v41  ;;  %v1017_v52 = vadd.f32 %v1016_v47, %v372_v48  ;;  %v1185_v53 = vpop.f32.mrf.mxu3  ;;  %v1287_v58 = vunpack.c.l.bf16 %v1255_v46  ;;  %v1647_v48 = vld [vmem:[%s2850_s1 + $0xd0] sm:$0xf]  ;;  %v1903_v8 = vld [vmem:[%s2850_s1 + $0xd4] sm:$0xf] }
  0xe1   :  { %1509 = vst.msk [vmem:[%s2851_s3 + $0x20] sm:$0xff] %vm1504_vm0, %v1476_v13  ;;  %v939_v55 = vpop.f32.mrf.mxu0  ;;  %v382_v13 = vpop.permute.xlu2 %381 }
  0xe2   :  { %1511 = vst.msk [vmem:[%s2851_s3 + $0x30] sm:$0xff] %vm1504_vm0, %v1478_v51  ;;  %v1186_v59 = vadd.f32 %v1185_v53, %v1017_v52  ;;  %v940_v63 = vadd.f32 %v939_v55, %v2280_v57  ;;  %v1108_v3 = vpop.f32.mrf.mxu1  ;;  %v1447_v36 = vshrl.u32 %v1287_v58, 16 }
  0xe4   :  { %v1351_v4 = vpack.c.bf16 %v1186_v59, %v1186_v59  ;;  %v1109_v7 = vadd.f32 %v1108_v3, %v940_v63  ;;  %978 = vmatmul.bf16.gmra.mxu0 %v1640_v54  ;;  %1058 = vmatmul.bf16.gmra.mxu2 %v1768_v35  ;;  %v1648_v54 = vor.u32 %v1904_v11, %v1647_v48  ;;  %v1906_v48 = vld [vmem:[%s2850_s1 + $0xe4] sm:$0xf0]  ;;  %v1783_v11 = vld [vmem:[%s2850_s1 + $0x1e0] sm:$0xf] }
  0xe5   :  { %1147 = vmatmul.bf16.gmra.mxu1 %v1644_v56  ;;  %1227 = vmatmul.bf16.gmra.mxu3 %v1772_v37  ;;  %v1652_v56 = vor.u32 %v1903_v8, %v1649_v14  ;;  %v1780_v37 = vor.u32 %v1935_v1, %v1777_v24  ;;  %v1785_v14 = vld [vmem:[%s2850_s1 + $0x1e8] sm:$0xf0]  ;;  %v392_v1 = vpop.permute.xlu1 %391 }
  0xe6   :  { %v1383_v12 = vunpack.c.l.bf16 %v1351_v4  ;;  %v1256_v23 = vpack.c.bf16 %v1109_v7, %v1109_v7 }
  0xe7   :  { %v1019_v17 = vpop.f32.mrf.mxu2 }
  0xe8   :  { %v1479_v20 = vor.u32 %v1447_v36, %v1383_v12  ;;  %v1288_v16 = vunpack.c.l.bf16 %v1256_v23  ;;  %v1020_v27 = vadd.f32 %v1019_v17, %v377_v0  ;;  %v1188_v28 = vpop.f32.mrf.mxu3  ;;  %v387_v0 = vpop.permute.xlu0 %386 }
  0xe9   :  { %v941_v32 = vpop.f32.mrf.mxu0 }
  0xea   :  { %1512 = vst.msk [vmem:[%s2851_s3 + $0x38] sm:$0xff] %vm1504_vm0, %v1479_v20  ;;  %v1189_v57 = vadd.f32 %v1188_v28, %v1020_v27  ;;  %v942_v42 = vadd.f32 %v941_v32, %v2394_v44  ;;  %v1110_v45 = vpop.f32.mrf.mxu1  ;;  %v1448_v18 = vshrl.u32 %v1288_v16, 16  ;;  %v1936_v44 = vld [vmem:[%s2850_s1 + $0x1d4] sm:$0xf0] }
  0xeb   :  { %v1776_v35 = vor.u32 %v1936_v44, %v1775_v10  ;;  %v1905_v10 = vld [vmem:[%s2850_s1 + $0xe4] sm:$0xf] }
  0xec   :  { %v1352_v34 = vpack.c.bf16 %v1189_v57, %v1189_v57  ;;  %v1111_v19 = vadd.f32 %v1110_v45, %v942_v42 }
  0xee   :  { %v1384_v41 = vunpack.c.l.bf16 %v1352_v34  ;;  %v1257_v46 = vpack.c.bf16 %v1111_v19, %v1111_v19  ;;  %v1655_v19 = vld [vmem:[%s2850_s1 + $0xe0] sm:$0xf] }
  0xef   :  { %v1021_v47 = vpop.f32.mrf.mxu2 }
  0xf0   :  { %v1480_v51 = vor.u32 %v1448_v18, %v1384_v41  ;;  %v1022_v52 = vadd.f32 %v1021_v47, %v382_v13  ;;  %v1190_v53 = vpop.f32.mrf.mxu3  ;;  %v1289_v58 = vunpack.c.l.bf16 %v1257_v46  ;;  %v1657_v41 = vld [vmem:[%s2850_s1 + $0xe8] sm:$0xf0]  ;;  %v1937_v46 = vld [vmem:[%s2850_s1 + $0x1e4] sm:$0xf] }
  0xf1   :  { %v944_v55 = vpop.f32.mrf.mxu0 }
  0xf2   :  { %1513 = vst.msk [vmem:[%s2851_s3 + $0x40] sm:$0xff] %vm1504_vm0, %v1480_v51  ;;  %v1191_v59 = vadd.f32 %v1190_v53, %v1022_v52  ;;  %v945_v63 = vadd.f32 %v944_v55, %v2392_v43  ;;  %v1113_v3 = vpop.f32.mrf.mxu1  ;;  %v1449_v36 = vshrl.u32 %v1289_v58, 16  ;;  %v1656_v52 = vor.u32 %v1906_v48, %v1655_v19  ;;  %v1665_v19 = vld [vmem:[%s2850_s1 + $0xf8] sm:$0xf0] }
  0xf3   :  { %v1788_v55 = vor.u32 %v1937_v46, %v1785_v14 }
  0xf4   :  { %v1353_v4 = vpack.c.bf16 %v1191_v59, %v1191_v59  ;;  %v1114_v7 = vadd.f32 %v1113_v3, %v945_v63  ;;  %983 = vmatmul.bf16.gmra.mxu0 %v1648_v54  ;;  %1063 = vmatmul.bf16.gmra.mxu2 %v1776_v35  ;;  %v1660_v35 = vor.u32 %v1905_v10, %v1657_v41  ;;  %v1939_v10 = vld [vmem:[%s2850_s1 + $0x1f4] sm:$0xf] }
  0xf5   :  { %1152 = vmatmul.bf16.gmra.mxu1 %v1652_v56  ;;  %1232 = vmatmul.bf16.gmra.mxu3 %v1780_v37 }
  0xf6   :  { %v1385_v12 = vunpack.c.l.bf16 %v1353_v4  ;;  %v1258_v23 = vpack.c.bf16 %v1114_v7, %v1114_v7 }
  0xf7   :  { %v1024_v17 = vpop.f32.mrf.mxu2 }
  0xf8   :  { %v1481_v20 = vor.u32 %v1449_v36, %v1385_v12  ;;  %v1290_v16 = vunpack.c.l.bf16 %v1258_v23  ;;  %v1025_v27 = vadd.f32 %v1024_v17, %v387_v0  ;;  %v1193_v28 = vpop.f32.mrf.mxu3  ;;  %v397_v12 = vpop.permute.xlu2 %396 }
  0xf9   :  { %v946_v32 = vpop.f32.mrf.mxu0 }
  0xfa   :  { %1514 = vst.msk [vmem:[%s2851_s3 + $0x48] sm:$0xff] %vm1504_vm0, %v1481_v20  ;;  %v1194_v43 = vadd.f32 %v1193_v28, %v1025_v27  ;;  %v947_v57 = vadd.f32 %v946_v32, %v2315_v9  ;;  %v1115_v42 = vpop.f32.mrf.mxu1  ;;  %v1450_v45 = vshrl.u32 %v1290_v16, 16  ;;  %v1938_v9 = vld [vmem:[%s2850_s1 + $0x1e4] sm:$0xf0] }
  0xfb   :  { %v1784_v53 = vor.u32 %v1938_v9, %v1783_v11 }
  0xfc   :  { %v1354_v18 = vpack.c.bf16 %v1194_v43, %v1194_v43  ;;  %v1116_v34 = vadd.f32 %v1115_v42, %v947_v57  ;;  %v1663_v42 = vld [vmem:[%s2850_s1 + $0xf0] sm:$0xf] }
  0xfe   :  { %v1386_v44 = vunpack.c.l.bf16 %v1354_v18  ;;  %v1259_v8 = vpack.c.bf16 %v1116_v34, %v1116_v34  ;;  %v1791_v18 = vld [vmem:[%s2850_s1 + $0x1f0] sm:$0xf]  ;;  %v1940_v34 = vld [vmem:[%s2850_s1 + $0x1f4] sm:$0xf0] }
  0xff   :  { %v1026_v24 = vpop.f32.mrf.mxu2 }
 0x100   :  { %v1482_v13 = vor.u32 %v1450_v45, %v1386_v44  ;;  %v1027_v47 = vadd.f32 %v1026_v24, %v392_v1  ;;  %v1195_v51 = vpop.f32.mrf.mxu3  ;;  %v1291_v56 = vunpack.c.l.bf16 %v1259_v8  ;;  %v1908_v45 = vld [vmem:[%s2850_s1 + $0xf4] sm:$0xf0]  ;;  %v1793_v44 = vld [vmem:[%s2850_s1 + $0x1f8] sm:$0xf0]  ;;  %v402_v8 = vpop.permute.xlu0 %401 }
 0x101   :  { %v949_v54 = vpop.f32.mrf.mxu0  ;;  %v1664_v24 = vor.u32 %v1908_v45, %v1663_v42 }
 0x102   :  { %1515 = vst.msk [vmem:[%s2851_s3 + $0x50] sm:$0xff] %vm1504_vm0, %v1482_v13  ;;  %v1196_v37 = vadd.f32 %v1195_v51, %v1027_v47  ;;  %v950_v58 = vadd.f32 %v949_v54, %v2427_v62  ;;  %v1118_v59 = vpop.f32.mrf.mxu1  ;;  %v1451_v4 = vshrl.u32 %v1291_v56, 16  ;;  %v1792_v13 = vor.u32 %v1940_v34, %v1791_v18 }
 0x104   :  { %v1355_v63 = vpack.c.bf16 %v1196_v37, %v1196_v37  ;;  %v1119_v3 = vadd.f32 %v1118_v59, %v950_v58  ;;  %988 = vmatmul.bf16.gmra.mxu0 %v1656_v52  ;;  %1068 = vmatmul.bf16.gmra.mxu2 %v1784_v53  ;;  %v1796_v52 = vor.u32 %v1939_v10, %v1793_v44 }
 0x105   :  { %1157 = vmatmul.bf16.gmra.mxu1 %v1660_v35  ;;  %1237 = vmatmul.bf16.gmra.mxu3 %v1788_v55 }
 0x106   :  { %v1387_v7 = vunpack.c.l.bf16 %v1355_v63  ;;  %v1260_v36 = vpack.c.bf16 %v1119_v3, %v1119_v3  ;;  %v407_v3 = vpop.permute.xlu1 %406 }
 0x107   :  { %v1029_v23 = vpop.f32.mrf.mxu2 }
 0x108   :  { %v1483_v0 = vor.u32 %v1451_v4, %v1387_v7  ;;  %v1030_v17 = vadd.f32 %v1029_v23, %v397_v12  ;;  %v1198_v20 = vpop.f32.mrf.mxu3  ;;  %v1292_v62 = vunpack.c.l.bf16 %v1260_v36 }
 0x109   :  { %v951_v16 = vpop.f32.mrf.mxu0 }
 0x10a   :  { %1516 = vst.msk [vmem:[%s2851_s3 + $0x58] sm:$0xff] %vm1504_vm0, %v1483_v0  ;;  %v1199_v27 = vadd.f32 %v1198_v20, %v1030_v17  ;;  %v952_v28 = vadd.f32 %v951_v16, %v2425_v61  ;;  %v1120_v32 = vpop.f32.mrf.mxu1  ;;  %v1907_v61 = vld [vmem:[%s2850_s1 + $0xf4] sm:$0xf]  ;;  %v1452_v48 = vshrl.u32 %v1292_v62, 16 }
 0x10b   :  { %v1668_v51 = vor.u32 %v1907_v61, %v1665_v19 }
 0x10c   :  { %v1356_v43 = vpack.c.bf16 %v1199_v27, %v1199_v27  ;;  %v1121_v57 = vadd.f32 %v1120_v32, %v952_v28 }
 0x10e   :  { %v1388_v11 = vunpack.c.l.bf16 %v1356_v43  ;;  %v1261_v9 = vpack.c.bf16 %v1121_v57, %v1121_v57  ;;  %v412_v43 = vpop.permute.xlu2 %411 }
 0x10f   :  { %v1031_v41 = vpop.f32.mrf.mxu2 }
 0x110   :  { %v1484_v46 = vor.u32 %v1452_v48, %v1388_v11  ;;  %v1032_v14 = vadd.f32 %v1031_v41, %v402_v8  ;;  %v1200_v1 = vpop.f32.mrf.mxu3  ;;  %v1293_v53 = vunpack.c.l.bf16 %v1261_v9  ;;  %v417_v41 = vpop.permute.xlu0 %416 }
 0x111   :  { %v954_v47 = vpop.f32.mrf.mxu0 }
 0x112   :  { %1517 = vst.msk [vmem:[%s2851_s3 + $0x60] sm:$0xff] %vm1504_vm0, %v1484_v46  ;;  %v1201_v54 = vadd.f32 %v1200_v1, %v1032_v14  ;;  %v955_v35 = vadd.f32 %v954_v47, %v2330_v15  ;;  %v1123_v55 = vpop.f32.mrf.mxu1  ;;  %v1453_v58 = vshrl.u32 %v1293_v53, 16 }
 0x114   :  { %v1357_v56 = vpack.c.bf16 %v1201_v54, %v1201_v54  ;;  %v1124_v37 = vadd.f32 %v1123_v55, %v955_v35  ;;  %993 = vmatmul.bf16.gmra.mxu0 %v1664_v24  ;;  %1073 = vmatmul.bf16.gmra.mxu2 %v1792_v13 }
 0x115   :  { %1162 = vmatmul.bf16.gmra.mxu1 %v1668_v51  ;;  %1242 = vmatmul.bf16.gmra.mxu3 %v1796_v52 }
 0x116   :  { %v1389_v59 = vunpack.c.l.bf16 %v1357_v56  ;;  %v1262_v63 = vpack.c.bf16 %v1124_v37, %v1124_v37  ;;  %v422_v37 = vpop.permute.xlu1 %421 }
 0x117   :  { %v1034_v4 = vpop.f32.mrf.mxu2 }
 0x118   :  { %v1485_v7 = vor.u32 %v1453_v58, %v1389_v59  ;;  %v1035_v36 = vadd.f32 %v1034_v4, %v407_v3  ;;  %v1203_v12 = vpop.f32.mrf.mxu3  ;;  %v1294_v15 = vunpack.c.l.bf16 %v1262_v63 }
 0x119   :  { %v956_v23 = vpop.f32.mrf.mxu0 }
 0x11a   :  { %1518 = vst.msk [vmem:[%s2851_s3 + $0x68] sm:$0xff] %vm1504_vm0, %v1485_v7  ;;  %v1204_v0 = vadd.f32 %v1203_v12, %v1035_v36  ;;  %v957_v17 = vadd.f32 %v956_v23, %v2448_v6  ;;  %v1125_v20 = vpop.f32.mrf.mxu1  ;;  %v1454_v27 = vshrl.u32 %v1294_v15, 16 }
 0x11c   :  { %v1358_v16 = vpack.c.bf16 %v1204_v0, %v1204_v0  ;;  %v1126_v62 = vadd.f32 %v1125_v20, %v957_v17 }
 0x11e   :  { %v1390_v28 = vunpack.c.l.bf16 %v1358_v16  ;;  %v1263_v32 = vpack.c.bf16 %v1126_v62, %v1126_v62  ;;  %v427_v16 = vpop.permute.xlu2 %426 }
 0x11f   :  { %v1036_v57 = vpop.f32.mrf.mxu2 }
 0x120   :  { %v1486_v42 = vor.u32 %v1454_v27, %v1390_v28  ;;  %v1037_v45 = vadd.f32 %v1036_v57, %v412_v43  ;;  %v1205_v18 = vpop.f32.mrf.mxu3  ;;  %v1295_v61 = vunpack.c.l.bf16 %v1263_v32 }
 0x121   :  { %v959_v34 = vpop.f32.mrf.mxu0 }
 0x122   :  { %1519 = vst.msk [vmem:[%s2851_s3 + $0x70] sm:$0xff] %vm1504_vm0, %v1486_v42  ;;  %v1206_v19 = vadd.f32 %v1205_v18, %v1037_v45  ;;  %v960_v6 = vadd.f32 %v959_v34, %v2446_v5  ;;  %v1128_v48 = vpop.f32.mrf.mxu1  ;;  %v1455_v10 = vshrl.u32 %v1295_v61, 16 }
 0x124   :  { %v1359_v11 = vpack.c.bf16 %v1206_v19, %v1206_v19  ;;  %v1129_v9 = vadd.f32 %v1128_v48, %v960_v6  ;;  %v432_v48 = vpop.permute.xlu0 %431 }
 0x126   :  { %v1391_v44 = vunpack.c.l.bf16 %v1359_v11  ;;  %v1264_v8 = vpack.c.bf16 %v1129_v9, %v1129_v9 }
 0x127   :  { %v1039_v46 = vpop.f32.mrf.mxu2 }
 0x128   :  { %v1487_v14 = vor.u32 %v1455_v10, %v1391_v44  ;;  %v1040_v1 = vadd.f32 %v1039_v46, %v417_v41  ;;  %v1208_v24 = vpop.f32.mrf.mxu3  ;;  %v1296_v47 = vunpack.c.l.bf16 %v1264_v8 }
 0x129   :  { %v961_v13 = vpop.f32.mrf.mxu0 }
 0x12a   :  { %1520 = vst.msk [vmem:[%s2851_s3 + $0x78] sm:$0xff] %vm1504_vm0, %v1487_v14  ;;  %v1209_v51 = vadd.f32 %v1208_v24, %v1040_v1  ;;  %v962_v5 = vadd.f32 %v961_v13, %v2369_v33  ;;  %v1130_v52 = vpop.f32.mrf.mxu1  ;;  %v1456_v35 = vshrl.u32 %v1296_v47, 16 }
 0x12c   :  { %v1360_v53 = vpack.c.bf16 %v1209_v51, %v1209_v51  ;;  %v1131_v54 = vadd.f32 %v1130_v52, %v962_v5  ;;  %v437_v5 = vpop.permute.xlu1 %436 }
 0x12e   :  { %v1392_v55 = vunpack.c.l.bf16 %v1360_v53  ;;  %v1265_v56 = vpack.c.bf16 %v1131_v54, %v1131_v54 }
 0x12f   :  { %v1041_v58 = vpop.f32.mrf.mxu2 }
 0x130   :  { %v1488_v59 = vor.u32 %v1456_v35, %v1392_v55  ;;  %v1042_v63 = vadd.f32 %v1041_v58, %v422_v37  ;;  %v1210_v3 = vpop.f32.mrf.mxu3  ;;  %v1297_v7 = vunpack.c.l.bf16 %v1265_v56 }
 0x131   :  { %v964_v4 = vpop.f32.mrf.mxu0 }
 0x132   :  { %1521 = vst.msk [vmem:[%s2851_s3 + $0x80] sm:$0xff] %vm1504_vm0, %v1488_v59  ;;  %v1211_v36 = vadd.f32 %v1210_v3, %v1042_v63  ;;  %v965_v33 = vadd.f32 %v964_v4, %v2482_v31  ;;  %v1133_v12 = vpop.f32.mrf.mxu1  ;;  %v1457_v0 = vshrl.u32 %v1297_v7, 16 }
 0x134   :  { %v1361_v23 = vpack.c.bf16 %v1211_v36, %v1211_v36  ;;  %v1134_v15 = vadd.f32 %v1133_v12, %v965_v33  ;;  %v442_v36 = vpop.permute.xlu2 %441 }
 0x136   :  { %v1393_v17 = vunpack.c.l.bf16 %v1361_v23  ;;  %v1266_v20 = vpack.c.bf16 %v1134_v15, %v1134_v15 }
 0x137   :  { %v1044_v62 = vpop.f32.mrf.mxu2 }
 0x138   :  { %v1489_v27 = vor.u32 %v1457_v0, %v1393_v17  ;;  %v1045_v28 = vadd.f32 %v1044_v62, %v427_v16  ;;  %v1213_v32 = vpop.f32.mrf.mxu3  ;;  %v1298_v57 = vunpack.c.l.bf16 %v1266_v20 }
 0x139   :  { %v966_v43 = vpop.f32.mrf.mxu0 }
 0x13a   :  { %1522 = vst.msk [vmem:[%s2851_s3 + $0x88] sm:$0xff] %vm1504_vm0, %v1489_v27  ;;  %v1214_v42 = vadd.f32 %v1213_v32, %v1045_v28  ;;  %v967_v31 = vadd.f32 %v966_v43, %v2480_v30  ;;  %v1135_v45 = vpop.f32.mrf.mxu1  ;;  %v1458_v61 = vshrl.u32 %v1298_v57, 16  ;;  %v447_v57 = vpop.permute.xlu0 %446 }
 0x13c   :  { %v1362_v18 = vpack.c.bf16 %v1214_v42, %v1214_v42  ;;  %v1136_v34 = vadd.f32 %v1135_v45, %v967_v31 }
 0x13e   :  { %v1394_v19 = vunpack.c.l.bf16 %v1362_v18  ;;  %v1267_v6 = vpack.c.bf16 %v1136_v34, %v1136_v34 }
 0x13f   :  { %v1046_v11 = vpop.f32.mrf.mxu2 }
 0x140   :  { %v1490_v9 = vor.u32 %v1458_v61, %v1394_v19  ;;  %v1047_v10 = vadd.f32 %v1046_v11, %v432_v48  ;;  %v1215_v44 = vpop.f32.mrf.mxu3  ;;  %v1299_v41 = vunpack.c.l.bf16 %v1267_v6 }
 0x141   :  { %v969_v8 = vpop.f32.mrf.mxu0 }
 0x142   :  { %1523 = vst.msk [vmem:[%s2851_s3 + $0x90] sm:$0xff] %vm1504_vm0, %v1490_v9  ;;  %v1216_v46 = vadd.f32 %v1215_v44, %v1047_v10  ;;  %v970_v30 = vadd.f32 %v969_v8, %v2384_v40  ;;  %v1138_v14 = vpop.f32.mrf.mxu1  ;;  %v1459_v13 = vshrl.u32 %v1299_v41, 16  ;;  %v452_v8 = vpop.permute.xlu1 %451 }
 0x144   :  { %v1363_v1 = vpack.c.bf16 %v1216_v46, %v1216_v46  ;;  %v1139_v24 = vadd.f32 %v1138_v14, %v970_v30 }
 0x146   :  { %v1395_v47 = vunpack.c.l.bf16 %v1363_v1  ;;  %v1268_v51 = vpack.c.bf16 %v1139_v24, %v1139_v24 }
 0x147   :  { %v1049_v52 = vpop.f32.mrf.mxu2 }
 0x148   :  { %v1491_v53 = vor.u32 %v1459_v13, %v1395_v47  ;;  %v1050_v54 = vadd.f32 %v1049_v52, %v437_v5  ;;  %v1218_v35 = vpop.f32.mrf.mxu3  ;;  %v1300_v56 = vunpack.c.l.bf16 %v1268_v51 }
 0x149   :  { %v971_v55 = vpop.f32.mrf.mxu0 }
 0x14a   :  { %1524 = vst.msk [vmem:[%s2851_s3 + $0x98] sm:$0xff] %vm1504_vm0, %v1491_v53  ;;  %v1219_v37 = vadd.f32 %v1218_v35, %v1050_v54  ;;  %v972_v40 = vadd.f32 %v971_v55, %v2499_v50  ;;  %v1140_v58 = vpop.f32.mrf.mxu1  ;;  %v1460_v3 = vshrl.u32 %v1300_v56, 16  ;;  %v457_v35 = vpop.permute.xlu2 %456 }
 0x14c   :  { %v1364_v59 = vpack.c.bf16 %v1219_v37, %v1219_v37  ;;  %v1141_v63 = vadd.f32 %v1140_v58, %v972_v40 }
 0x14e   :  { %v1396_v4 = vunpack.c.l.bf16 %v1364_v59  ;;  %v1269_v7 = vpack.c.bf16 %v1141_v63, %v1141_v63 }
 0x14f   :  { %v1051_v33 = vpop.f32.mrf.mxu2 }
 0x150   :  { %v1492_v12 = vor.u32 %v1460_v3, %v1396_v4  ;;  %v1052_v23 = vadd.f32 %v1051_v33, %v442_v36  ;;  %v1220_v15 = vpop.f32.mrf.mxu3  ;;  %v1301_v17 = vunpack.c.l.bf16 %v1269_v7 }
 0x151   :  { %v974_v0 = vpop.f32.mrf.mxu0 }
 0x152   :  { %1525 = vst.msk [vmem:[%s2851_s3 + $0xa0] sm:$0xff] %vm1504_vm0, %v1492_v12  ;;  %v1221_v20 = vadd.f32 %v1220_v15, %v1052_v23  ;;  %v975_v50 = vadd.f32 %v974_v0, %v2497_v49  ;;  %v1143_v16 = vpop.f32.mrf.mxu1  ;;  %v1461_v28 = vshrl.u32 %v1301_v17, 16  ;;  %v462_v23 = vpop.permute.xlu0 %461 }
 0x154   :  { %v1365_v62 = vpack.c.bf16 %v1221_v20, %v1221_v20  ;;  %v1144_v27 = vadd.f32 %v1143_v16, %v975_v50 }
 0x156   :  { %v1397_v32 = vunpack.c.l.bf16 %v1365_v62  ;;  %v1270_v43 = vpack.c.bf16 %v1144_v27, %v1144_v27 }
 0x157   :  { %v1054_v42 = vpop.f32.mrf.mxu2 }
 0x158   :  { %v1493_v31 = vor.u32 %v1461_v28, %v1397_v32  ;;  %v1055_v45 = vadd.f32 %v1054_v42, %v447_v57  ;;  %v1223_v18 = vpop.f32.mrf.mxu3  ;;  %v1302_v61 = vunpack.c.l.bf16 %v1270_v43 }
 0x159   :  { %v976_v34 = vpop.f32.mrf.mxu0 }
 0x15a   :  { %1526 = vst.msk [vmem:[%s2851_s3 + $0xa8] sm:$0xff] %vm1504_vm0, %v1493_v31  ;;  %v1224_v19 = vadd.f32 %v1223_v18, %v1055_v45  ;;  %v977_v49 = vadd.f32 %v976_v34, %v2423_v60  ;;  %v1145_v6 = vpop.f32.mrf.mxu1  ;;  %v1462_v9 = vshrl.u32 %v1302_v61, 16  ;;  %v467_v31 = vpop.permute.xlu1 %466 }
 0x15c   :  { %v1366_v48 = vpack.c.bf16 %v1224_v19, %v1224_v19  ;;  %v1146_v11 = vadd.f32 %v1145_v6, %v977_v49 }
 0x15e   :  { %v1398_v10 = vunpack.c.l.bf16 %v1366_v48  ;;  %v1271_v44 = vpack.c.bf16 %v1146_v11, %v1146_v11 }
 0x15f   :  { %v1056_v41 = vpop.f32.mrf.mxu2 }
 0x160   :  { %v1494_v46 = vor.u32 %v1462_v9, %v1398_v10  ;;  %v1057_v30 = vadd.f32 %v1056_v41, %v452_v8  ;;  %v1225_v14 = vpop.f32.mrf.mxu3  ;;  %v1303_v24 = vunpack.c.l.bf16 %v1271_v44  ;;  %v472_v41 = vpop.permute.xlu2 %471 }
 0x161   :  { %v979_v1 = vpop.f32.mrf.mxu0 }
 0x162   :  { %1527 = vst.msk [vmem:[%s2851_s3 + $0xb0] sm:$0xff] %vm1504_vm0, %v1494_v46  ;;  %v1226_v13 = vadd.f32 %v1225_v14, %v1057_v30  ;;  %v980_v60 = vadd.f32 %v979_v1, %v2525_v22  ;;  %v1148_v47 = vpop.f32.mrf.mxu1  ;;  %v1463_v52 = vshrl.u32 %v1303_v24, 16 }
 0x164   :  { %v1367_v51 = vpack.c.bf16 %v1226_v13, %v1226_v13  ;;  %v1149_v5 = vadd.f32 %v1148_v47, %v980_v60 }
 0x166   :  { %v1399_v53 = vunpack.c.l.bf16 %v1367_v51  ;;  %v1272_v54 = vpack.c.bf16 %v1149_v5, %v1149_v5 }
 0x167   :  { %v1059_v55 = vpop.f32.mrf.mxu2 }
 0x168   :  { %v1495_v56 = vor.u32 %v1463_v52, %v1399_v53  ;;  %v1060_v37 = vadd.f32 %v1059_v55, %v457_v35  ;;  %v1228_v40 = vpop.f32.mrf.mxu3  ;;  %v1304_v59 = vunpack.c.l.bf16 %v1272_v54  ;;  %v477_v35 = vpop.permute.xlu0 %476 }
 0x169   :  { %v981_v58 = vpop.f32.mrf.mxu0 }
 0x16a   :  { %1528 = vst.msk [vmem:[%s2851_s3 + $0xb8] sm:$0xff] %vm1504_vm0, %v1495_v56  ;;  %v1229_v63 = vadd.f32 %v1228_v40, %v1060_v37  ;;  %v982_v22 = vadd.f32 %v981_v58, %v2523_v21  ;;  %v1150_v3 = vpop.f32.mrf.mxu1  ;;  %v1464_v36 = vshrl.u32 %v1304_v59, 16 }
 0x16c   :  { %v1368_v4 = vpack.c.bf16 %v1229_v63, %v1229_v63  ;;  %v1151_v7 = vadd.f32 %v1150_v3, %v982_v22 }
 0x16e   :  { %v1400_v33 = vunpack.c.l.bf16 %v1368_v4  ;;  %v1273_v12 = vpack.c.bf16 %v1151_v7, %v1151_v7 }
 0x16f   :  { %v1061_v15 = vpop.f32.mrf.mxu2 }
 0x170   :  { %v1496_v0 = vor.u32 %v1464_v36, %v1400_v33  ;;  %v1062_v17 = vadd.f32 %v1061_v15, %v462_v23  ;;  %v1230_v20 = vpop.f32.mrf.mxu3  ;;  %v1305_v16 = vunpack.c.l.bf16 %v1273_v12  ;;  %v482_v12 = vpop.permute.xlu1 %481 }
 0x171   :  { %v984_v50 = vpop.f32.mrf.mxu0 }
 0x172   :  { %1529 = vst.msk [vmem:[%s2851_s3 + $0xc0] sm:$0xff] %vm1504_vm0, %v1496_v0  ;;  %v1231_v62 = vadd.f32 %v1230_v20, %v1062_v17  ;;  %v985_v21 = vadd.f32 %v984_v50, %v2438_v2  ;;  %v1153_v27 = vpop.f32.mrf.mxu1  ;;  %v1465_v43 = vshrl.u32 %v1305_v16, 16 }
 0x174   :  { %v1369_v28 = vpack.c.bf16 %v1231_v62, %v1231_v62  ;;  %v1154_v32 = vadd.f32 %v1153_v27, %v985_v21 }
 0x176   :  { %v1401_v57 = vunpack.c.l.bf16 %v1369_v28  ;;  %v1274_v42 = vpack.c.bf16 %v1154_v32, %v1154_v32 }
 0x177   :  { %v1064_v45 = vpop.f32.mrf.mxu2 }
 0x178   :  { %v1497_v18 = vor.u32 %v1465_v43, %v1401_v57  ;;  %v1065_v34 = vadd.f32 %v1064_v45, %v467_v31  ;;  %v1233_v61 = vpop.f32.mrf.mxu3  ;;  %v1306_v49 = vunpack.c.l.bf16 %v1274_v42  ;;  %v487_v57 = vpop.permute.xlu2 %486 }
 0x179   :  { %v986_v19 = vpop.f32.mrf.mxu0 }
 0x17a   :  { %1530 = vst.msk [vmem:[%s2851_s3 + $0xc8] sm:$0xff] %vm1504_vm0, %v1497_v18  ;;  %v1234_v6 = vadd.f32 %v1233_v61, %v1065_v34  ;;  %v987_v2 = vadd.f32 %v986_v19, %v2542_v39  ;;  %v1155_v48 = vpop.f32.mrf.mxu1  ;;  %v1466_v10 = vshrl.u32 %v1306_v49, 16 }
 0x17c   :  { %v1370_v11 = vpack.c.bf16 %v1234_v6, %v1234_v6  ;;  %v1156_v9 = vadd.f32 %v1155_v48, %v987_v2 }
 0x17e   :  { %v1402_v44 = vunpack.c.l.bf16 %v1370_v11  ;;  %v1275_v8 = vpack.c.bf16 %v1156_v9, %v1156_v9 }
 0x17f   :  { %v1066_v46 = vpop.f32.mrf.mxu2 }
 0x180   :  { %v1498_v30 = vor.u32 %v1466_v10, %v1402_v44  ;;  %v1067_v14 = vadd.f32 %v1066_v46, %v472_v41  ;;  %v1235_v1 = vpop.f32.mrf.mxu3  ;;  %v1307_v13 = vunpack.c.l.bf16 %v1275_v8  ;;  %v492_v10 = vpop.permute.xlu0 %491 }
 0x181   :  { %v989_v24 = vpop.f32.mrf.mxu0 }
 0x182   :  { %1531 = vst.msk [vmem:[%s2851_s3 + $0xd0] sm:$0xff] %vm1504_vm0, %v1498_v30  ;;  %v1236_v60 = vadd.f32 %v1235_v1, %v1067_v14  ;;  %v990_v39 = vadd.f32 %v989_v24, %v2540_v38  ;;  %v1158_v47 = vpop.f32.mrf.mxu1  ;;  %v1467_v52 = vshrl.u32 %v1307_v13, 16 }
 0x184   :  { %v1371_v51 = vpack.c.bf16 %v1236_v60, %v1236_v60  ;;  %v1159_v5 = vadd.f32 %v1158_v47, %v990_v39 }
 0x186   :  { %v1403_v53 = vunpack.c.l.bf16 %v1371_v51  ;;  %v1276_v54 = vpack.c.bf16 %v1159_v5, %v1159_v5 }
 0x187   :  { %v1069_v55 = vpop.f32.mrf.mxu2 }
 0x188   :  { %v1499_v56 = vor.u32 %v1467_v52, %v1403_v53  ;;  %v1070_v37 = vadd.f32 %v1069_v55, %v477_v35  ;;  %v1238_v40 = vpop.f32.mrf.mxu3  ;;  %v1308_v59 = vunpack.c.l.bf16 %v1276_v54 }
 0x189   :  { %v991_v58 = vpop.f32.mrf.mxu0 }
 0x18a   :  { %1532 = vst.msk [vmem:[%s2851_s3 + $0xd8] sm:$0xff] %vm1504_vm0, %v1499_v56  ;;  %v1239_v63 = vadd.f32 %v1238_v40, %v1070_v37  ;;  %v992_v38 = vadd.f32 %v991_v58, %v2478_v29  ;;  %v1160_v22 = vpop.f32.mrf.mxu1  ;;  %v1468_v7 = vshrl.u32 %v1308_v59, 16 }
 0x18c   :  { %v1372_v3 = vpack.c.bf16 %v1239_v63, %v1239_v63  ;;  %v1161_v4 = vadd.f32 %v1160_v22, %v992_v38 }
 0x18e   :  { %v1404_v36 = vunpack.c.l.bf16 %v1372_v3  ;;  %v1277_v33 = vpack.c.bf16 %v1161_v4, %v1161_v4 }
 0x18f   :  { %v1071_v23 = vpop.f32.mrf.mxu2 }
 0x190   :  { %v1500_v15 = vor.u32 %v1468_v7, %v1404_v36  ;;  %v1072_v0 = vadd.f32 %v1071_v23, %v482_v12  ;;  %v1240_v17 = vpop.f32.mrf.mxu3  ;;  %v1309_v50 = vunpack.c.l.bf16 %v1277_v33 }
 0x191   :  { %v994_v20 = vpop.f32.mrf.mxu0 }
 0x192   :  { %1533 = vst.msk [vmem:[%s2851_s3 + $0xe0] sm:$0xff] %vm1504_vm0, %v1500_v15  ;;  %v1241_v16 = vadd.f32 %v1240_v17, %v1072_v0  ;;  %v995_v29 = vadd.f32 %v994_v20, %v2567_v26  ;;  %v1163_v62 = vpop.f32.mrf.mxu1  ;;  %v1469_v28 = vshrl.u32 %v1309_v50, 16 }
 0x194   :  { %v1373_v21 = vpack.c.bf16 %v1241_v16, %v1241_v16  ;;  %v1164_v27 = vadd.f32 %v1163_v62, %v995_v29 }
 0x196   :  { %v1405_v32 = vunpack.c.l.bf16 %v1373_v21  ;;  %v1278_v43 = vpack.c.bf16 %v1164_v27, %v1164_v27 }
 0x197   :  { %v1074_v42 = vpop.f32.mrf.mxu2 }
 0x198   :  { %v1501_v31 = vor.u32 %v1469_v28, %v1405_v32  ;;  %v1075_v45 = vadd.f32 %v1074_v42, %v487_v57  ;;  %v1243_v18 = vpop.f32.mrf.mxu3  ;;  %v1310_v61 = vunpack.c.l.bf16 %v1278_v43 }
 0x199   :  { %v996_v34 = vpop.f32.mrf.mxu0 }
 0x19a   :  { %1534 = vst.msk [vmem:[%s2851_s3 + $0xe8] sm:$0xff] %vm1504_vm0, %v1501_v31  ;;  %v1244_v19 = vadd.f32 %v1243_v18, %v1075_v45  ;;  %v997_v26 = vadd.f32 %v996_v34, %v2565_v25  ;;  %v1165_v49 = vpop.f32.mrf.mxu1  ;;  %v1470_v48 = vshrl.u32 %v1310_v61, 16 }
 0x19c   :  { %v1374_v6 = vpack.c.bf16 %v1244_v19, %v1244_v19  ;;  %v1166_v2 = vadd.f32 %v1165_v49, %v997_v26 }
 0x19e   :  { %v1406_v11 = vunpack.c.l.bf16 %v1374_v6  ;;  %v1279_v9 = vpack.c.bf16 %v1166_v2, %v1166_v2 }
 0x19f   :  { %v1076_v44 = vpop.f32.mrf.mxu2 }
 0x1a0   :  { %v1502_v8 = vor.u32 %v1470_v48, %v1406_v11  ;;  %v1077_v41 = vadd.f32 %v1076_v44, %v492_v10  ;;  %v1245_v46 = vpop.f32.mrf.mxu3  ;;  %v1311_v30 = vunpack.c.l.bf16 %v1279_v9 }
 0x1a2   :  { %1535 = vst.msk [vmem:[%s2851_s3 + $0xf0] sm:$0xff] %vm1504_vm0, %v1502_v8  ;;  %v1246_v14 = vadd.f32 %v1245_v46, %v1077_v41  ;;  %v1471_v25 = vshrl.u32 %v1311_v30, 16 }
 0x1a4   :  { %v1375_v1 = vpack.c.bf16 %v1246_v14, %v1246_v14 }
 0x1a6   :  { %v1407_v24 = vunpack.c.l.bf16 %v1375_v1 }
 0x1a8   :  { %v1503_v13 = vor.u32 %v1471_v25, %v1407_v24 }
 0x1aa   :  { %1536 = vst.msk [vmem:[%s2851_s3 + $0xf8] sm:$0xff] %vm1504_vm0, %v1503_v13 }

</bundles_post_ra>
